<compile_context>
chip_gen: v7x
topology: tpu7x:2x2x1
jax: 0.10.0
libtpu: 0.0.40
codegen_flags: <defaults>
</compile_context>

<pallas_src>
import numpy as np
import jax
import jax.numpy as jnp
from jax.experimental import pallas as pl
from jax.experimental.pallas import tpu as pltpu

# ----------------------------- configuration (mirrors BatchWhitener.__init__) ------------------
SAMPLE_RATE = 64.0
KERNEL_LENGTH = 2.0
INFERENCE_SAMPLING_RATE = 16.0
BATCH_SIZE = 4
FDURATION = 1.0
FFTLENGTH = 1.0
HIGHPASS = 4.0
NUM_CHANNELS = 2

STRIDE_SIZE = int(SAMPLE_RATE / INFERENCE_SAMPLING_RATE)          # 4
KERNEL_SIZE = int(KERNEL_LENGTH * SAMPLE_RATE)                    # 128
STRIDES = (BATCH_SIZE - 1) * STRIDE_SIZE                          # 12
FSIZE = int(FDURATION * SAMPLE_RATE)                              # 64
SIZE = STRIDES + KERNEL_SIZE + FSIZE                              # 204  (PsdEstimator.size)
PAD = FSIZE // 2                                                  # 32

NPERSEG = int(FFTLENGTH * SAMPLE_RATE)                            # 64
NSTRIDE = NPERSEG - NPERSEG // 2                                  # 32 (overlap = fftlength / 2)
NFREQ_PSD = NPERSEG // 2 + 1                                      # 33
NFREQ_X = SIZE // 2 + 1                                           # 103

BACKGROUND_LEN = 512                                              # samples used for the PSD
TOTAL_LEN = BACKGROUND_LEN + SIZE                                 # 716
N_SEG = (BACKGROUND_LEN - NPERSEG) // NSTRIDE + 1                 # 15 Welch segments

# TPU-friendly padded sizes
FP = 128                                                          # 33 / 103 freq bins -> 128 lanes
TP = 256                                                          # 204 time samples  -> 256 lanes
ROWS = 8                                                          # sublane-aligned rows per block
OUT_W = BATCH_SIZE * KERNEL_SIZE                                  # 512 lane-dense output width


# ----------------------------- constant operators (precomputed in float64) ---------------------
def _hann(n):
    k = np.arange(n)
    return 0.5 * (1.0 - np.cos(2.0 * np.pi * k / n))          # periodic (torch.hann_window default)


def _median_bias(n):
    ii_2 = 2.0 * np.arange(1, (n - 1) // 2 + 1)
    return float(1.0 + np.sum(1.0 / (ii_2 + 1.0) - 1.0 / ii_2))


MEDIAN_BIAS = _median_bias(N_SEG)


def _build_constants():
    # --- Welch weights: detrend + hann + real-DFT + one-sided scaling + median-bias folded into
    #     ONE (NPERSEG, 2*FP) weight; cos half in lanes [0,128), sin half in [128,256). ---
    n = np.arange(NPERSEG)[:, None]
    f = np.arange(NFREQ_PSD)[None, :]
    hann = _hann(NPERSEG)
    detrend = np.eye(NPERSEG) - np.ones((NPERSEG, NPERSEG)) / NPERSEG
    dft_cos = np.cos(2.0 * np.pi * n * f / NPERSEG)
    dft_sin = -np.sin(2.0 * np.pi * n * f / NPERSEG)
    scale = np.full(NFREQ_PSD, 1.0 / (SAMPLE_RATE * np.sum(hann ** 2)))
    scale[1:-1] *= 2.0                                            # one-sided, not DC / Nyquist
    root = np.sqrt(scale / MEDIAN_BIAS)[None, :]
    pre = detrend @ np.diag(hann)
    w_psd = np.zeros((NPERSEG, 2 * FP))
    w_psd[:, :NFREQ_PSD] = (pre @ dft_cos) * root
    w_psd[:, FP:FP + NFREQ_PSD] = (pre @ dft_sin) * root

    # --- PSD-grid -> X-grid linear interpolation as a matrix (exact equivalent of jnp.interp). ---
    freqs_psd = np.fft.rfftfreq(NPERSEG, d=1.0 / SAMPLE_RATE)
    freqs_x = np.fft.rfftfreq(SIZE, d=1.0 / SAMPLE_RATE)
    interp = np.zeros((NFREQ_PSD, NFREQ_X))
    for i in range(NFREQ_PSD):
        basis = np.zeros(NFREQ_PSD)
        basis[i] = 1.0
        interp[i] = np.interp(freqs_x, freqs_psd, basis)

    # --- inverse-spectrum truncation: irfft -> taper edges / zero middle -> rfft (real part)
    #     is linear in inv_asd; precompute it (with highpass mask and sqrt(2/fs) normalization)
    #     as one (NFREQ_X, NFREQ_X) real operator. ---
    nx = np.arange(SIZE)
    fx = np.arange(NFREQ_X)
    cf = np.full(NFREQ_X, 2.0)
    cf[0] = 1.0
    cf[-1] = 1.0                                                  # SIZE even -> real Nyquist bin
    inv_cos = cf[:, None] * np.cos(2.0 * np.pi * np.outer(fx, nx) / SIZE) / SIZE   # (Fx, SIZE)
    inv_sin = -cf[:, None] * np.sin(2.0 * np.pi * np.outer(fx, nx) / SIZE) / SIZE
    fwd_cos = np.cos(2.0 * np.pi * np.outer(nx, fx) / SIZE)                         # (SIZE, Fx)
    fwd_sin = -np.sin(2.0 * np.pi * np.outer(nx, fx) / SIZE)
    taper = _hann(2 * PAD)
    tmask = np.zeros(SIZE)
    tmask[:PAD] = taper[PAD:]
    tmask[SIZE - PAD:] = taper[:PAD]
    trunc = inv_cos @ np.diag(tmask) @ fwd_cos * np.sqrt(2.0 / SAMPLE_RATE)
    trunc = (freqs_x >= HIGHPASS).astype(np.float64)[:, None] * trunc               # highpass

    # pack interp + truncation into one operand slab, 128-row-aligned halves
    slab = np.zeros((2 * FP, FP))
    slab[:NFREQ_PSD, :NFREQ_X] = interp
    slab[FP:FP + NFREQ_X, :NFREQ_X] = trunc

    # --- whitening rfft weight, lane/row padded: rows [0,SIZE) valid, cols [cos | -sin] ---
    fwd = np.zeros((TP, 2 * FP))
    fwd[:SIZE, :NFREQ_X] = fwd_cos
    fwd[:SIZE, FP:FP + NFREQ_X] = fwd_sin

    # --- irfft fused with crop(fduration/2) + unfold_windows(kernel, stride): output column
    #     b*K + k reconstructs whitened sample PAD + b*stride + k, so the kernel directly emits
    #     the final batched windows as one lane-dense (.., 512) matmul. ---
    inv_win = np.zeros((2 * FP, OUT_W))
    for b in range(BATCH_SIZE):
        c0 = PAD + b * STRIDE_SIZE
        inv_win[:NFREQ_X, b * KERNEL_SIZE:(b + 1) * KERNEL_SIZE] = inv_cos[:, c0:c0 + KERNEL_SIZE]
        inv_win[FP:FP + NFREQ_X, b * KERNEL_SIZE:(b + 1) * KERNEL_SIZE] = inv_sin[:, c0:c0 + KERNEL_SIZE]

    as_f32 = lambda a: jnp.asarray(a, jnp.float32)
    return as_f32(w_psd), as_f32(slab), as_f32(fwd), as_f32(inv_win)


W_PSD, INTERP_TRUNC, FWD_DFT, INV_WIN = _build_constants()

_SEG_IDX = np.arange(N_SEG)[:, None] * NSTRIDE + np.arange(NPERSEG)[None, :]       # Welch unfold


# ----------------------------- the single fused Pallas kernel ----------------------------------
def _batch_whitener_kernel(segs_ref, x_ref, wpsd_ref, slab_ref, fwd_ref, invw_ref, o_ref):
    """Welch periodograms -> median PSD -> inverse-ASD filter -> whitening -> batched windows.

    segs_ref : (N_SEG*ROWS, NPERSEG)  Welch segments; rows [s*8, s*8+C) real, rest zero padding
    x_ref    : (ROWS, TP)             segment to whiten; rows [0,C), lanes [0,SIZE) real
    wpsd_ref : (NPERSEG, 2*FP)        fused detrend/hann/rDFT/scale weights (cos | sin)
    slab_ref : (2*FP, FP)             [interp ; inverse-spectrum-truncation] operators
    fwd_ref  : (TP, 2*FP)             fused rfft weights (cos | -sin), row/lane padded
    invw_ref : (2*FP, OUT_W)          irfft fused with crop + unfold_windows
    o_ref    : (ROWS, OUT_W)          rows [0,C): window b of channel c at lanes [b*K,(b+1)*K)
    """
    # 1) Welch periodograms: one MXU matmul (window / detrend / scale / bias live in the weights)
    spec = jnp.dot(segs_ref[...], wpsd_ref[...], preferred_element_type=jnp.float32)
    power = spec[:, :FP] ** 2 + spec[:, FP:] ** 2                 # (N_SEG*ROWS, FP)

    # 2) median over the N_SEG segments per (channel, freq) via a compare-exchange network on
    #    vreg-aligned (8,128) blocks: after ceil(N/2) bubble passes the 8 largest are in place,
    #    so block index (N-1)//2 holds the median (N_SEG = 15 is odd).
    rows = [power[s * ROWS:(s + 1) * ROWS, :] for s in range(N_SEG)]
    for p in range((N_SEG + 1) // 2):
        for j in range(N_SEG - 1 - p):
            lo = jnp.minimum(rows[j], rows[j + 1])
            hi = jnp.maximum(rows[j], rows[j + 1])
            rows[j], rows[j + 1] = lo, hi
    psd = rows[(N_SEG - 1) // 2]                                  # (ROWS, FP), bias-corrected PSD

    # 3) whitening filter: interpolate to the x-frequency grid, 1/sqrt, then the precomputed
    #    (highpass + inverse-spectrum truncation + sqrt(2/fs)) linear operator.
    psd_x = jnp.dot(psd, slab_ref[:FP, :], preferred_element_type=jnp.float32)       # (ROWS, FP)
    inv_asd = jnp.where(psd_x > 0.0, jax.lax.rsqrt(jnp.maximum(psd_x, 1e-38)), 0.0)
    wfilt = jnp.dot(inv_asd, slab_ref[FP:, :], preferred_element_type=jnp.float32)   # (ROWS, FP)

    # 4) whiten + window: rfft(x) * filter -> (irfft ∘ crop ∘ unfold) as fused matmuls
    xf = jnp.dot(x_ref[...], fwd_ref[...], preferred_element_type=jnp.float32)       # (ROWS, 2*FP)
    xw = xf * jnp.concatenate([wfilt, wfilt], axis=1)
    o_ref[...] = jnp.dot(xw, invw_ref[...], preferred_element_type=jnp.float32)      # (ROWS, OUT_W)


def _fused_whiten(segs, xseg):
    vmem = pl.BlockSpec(memory_space=pltpu.MemorySpace.VMEM)      # whole array, single invocation
    return pl.pallas_call(
        _batch_whitener_kernel,
        out_shape=jax.ShapeDtypeStruct((ROWS, OUT_W), jnp.float32),
        in_specs=[vmem] * 6,
        out_specs=vmem,
    )(segs, xseg, W_PSD, INTERP_TRUNC, FWD_DFT, INV_WIN)


# ----------------------------- full forward (thin layout glue + one kernel) --------------------
def batch_whitener_forward(x):
    """x: (NUM_CHANNELS, TOTAL_LEN) float32 -> (BATCH_SIZE, NUM_CHANNELS, KERNEL_SIZE)."""
    C, T = x.shape
    assert C == NUM_CHANNELS and T == TOTAL_LEN
    x = x.astype(jnp.float32)

    # PsdEstimator split
    background = x[:, :T - SIZE]
    seg = x[:, T - SIZE:]

    # Welch segment unfold, padded so each segment block is a full 8-sublane group (layout only)
    segs = background[:, _SEG_IDX]                                # (C, N_SEG, NPERSEG)
    segs = jnp.transpose(segs, (1, 0, 2))                         # (N_SEG, C, NPERSEG)
    segs = jnp.pad(segs, ((0, 0), (0, ROWS - C), (0, 0))).reshape(N_SEG * ROWS, NPERSEG)

    # whiten-input padded to (8, 256) so every kernel operand is (8k, 128k)
    xpad = jnp.pad(seg, ((0, ROWS - C), (0, TP - SIZE)))

    # fused PSD + whitening + crop + unfold (Pallas); kernel emits the final windows lane-dense
    y = _fused_whiten(segs, xpad)                                 # (ROWS, BATCH*K)
    y = y[:C].reshape(C, BATCH_SIZE, KERNEL_SIZE)
    return jnp.transpose(y, (1, 0, 2))                            # (BATCH, C, KERNEL_SIZE)


# ----------------------------- demo -------------------------------------------------------------
if __name__ == "__main__":
    key = jax.random.PRNGKey(0)
    x = jax.random.normal(key, (NUM_CHANNELS, TOTAL_LEN), dtype=jnp.float32)

    out = jax.jit(batch_whitener_forward)(x)
    out = jax.block_until_ready(out)

    assert out.shape == (BATCH_SIZE, NUM_CHANNELS, KERNEL_SIZE), out.shape
    assert bool(jnp.all(jnp.isfinite(out)))
    assert bool(jnp.std(out) > 0.0)
    print("KERNEL_OK")
</pallas_src>

<mosaic_0001>
module attributes {stable_mosaic.version = 11 : i64} {
  func.func @_batch_whitener_kernel(%arg0: memref<120x64xf32, #tpu.memory_space<vmem>>, %arg1: memref<8x256xf32, #tpu.memory_space<vmem>>, %arg2: memref<64x256xf32, #tpu.memory_space<vmem>>, %arg3: memref<256x128xf32, #tpu.memory_space<vmem>>, %arg4: memref<256x256xf32, #tpu.memory_space<vmem>>, %arg5: memref<256x512xf32, #tpu.memory_space<vmem>>, %arg6: memref<8x512xf32, #tpu.memory_space<vmem>>) attributes {dimension_semantics = [], scalar_prefetch = 0 : i64, scratch_operands = 0 : i64, tpu.core_type = #tpu.core_type<tc>} {
    %c0 = arith.constant 0 : index
    %c0_0 = arith.constant 0 : index
    %0 = vector.load %arg0[%c0, %c0_0] : memref<120x64xf32, #tpu.memory_space<vmem>>, vector<120x64xf32>
    %c0_1 = arith.constant 0 : index
    %c0_2 = arith.constant 0 : index
    %1 = vector.load %arg2[%c0_1, %c0_2] : memref<64x256xf32, #tpu.memory_space<vmem>>, vector<64x256xf32>
    %cst = arith.constant dense<0.000000e+00> : vector<120x256xf32>
    %2 = tpu.matmul %0, %1, %cst {dimension_numbers = #tpu.dot_dimension_numbers<[1], [0], [0], [1], [0, 0, 1, 1], [], []>} : vector<120x64xf32>, vector<64x256xf32>, vector<120x256xf32> -> vector<120x256xf32>
    %3 = vector.extract_strided_slice %2 {offsets = [0, 0], sizes = [120, 128], strides = [1, 1]} : vector<120x256xf32> to vector<120x128xf32>
    %4 = arith.mulf %3, %3 : vector<120x128xf32>
    %5 = vector.extract_strided_slice %2 {offsets = [0, 128], sizes = [120, 128], strides = [1, 1]} : vector<120x256xf32> to vector<120x128xf32>
    %6 = arith.mulf %5, %5 : vector<120x128xf32>
    %7 = arith.addf %4, %6 : vector<120x128xf32>
    %8 = vector.extract_strided_slice %7 {offsets = [0, 0], sizes = [8, 128], strides = [1, 1]} : vector<120x128xf32> to vector<8x128xf32>
    %9 = vector.extract_strided_slice %7 {offsets = [8, 0], sizes = [8, 128], strides = [1, 1]} : vector<120x128xf32> to vector<8x128xf32>
    %10 = vector.extract_strided_slice %7 {offsets = [16, 0], sizes = [8, 128], strides = [1, 1]} : vector<120x128xf32> to vector<8x128xf32>
    %11 = vector.extract_strided_slice %7 {offsets = [24, 0], sizes = [8, 128], strides = [1, 1]} : vector<120x128xf32> to vector<8x128xf32>
    %12 = vector.extract_strided_slice %7 {offsets = [32, 0], sizes = [8, 128], strides = [1, 1]} : vector<120x128xf32> to vector<8x128xf32>
    %13 = vector.extract_strided_slice %7 {offsets = [40, 0], sizes = [8, 128], strides = [1, 1]} : vector<120x128xf32> to vector<8x128xf32>
    %14 = vector.extract_strided_slice %7 {offsets = [48, 0], sizes = [8, 128], strides = [1, 1]} : vector<120x128xf32> to vector<8x128xf32>
    %15 = vector.extract_strided_slice %7 {offsets = [56, 0], sizes = [8, 128], strides = [1, 1]} : vector<120x128xf32> to vector<8x128xf32>
    %16 = vector.extract_strided_slice %7 {offsets = [64, 0], sizes = [8, 128], strides = [1, 1]} : vector<120x128xf32> to vector<8x128xf32>
    %17 = vector.extract_strided_slice %7 {offsets = [72, 0], sizes = [8, 128], strides = [1, 1]} : vector<120x128xf32> to vector<8x128xf32>
    %18 = vector.extract_strided_slice %7 {offsets = [80, 0], sizes = [8, 128], strides = [1, 1]} : vector<120x128xf32> to vector<8x128xf32>
    %19 = vector.extract_strided_slice %7 {offsets = [88, 0], sizes = [8, 128], strides = [1, 1]} : vector<120x128xf32> to vector<8x128xf32>
    %20 = vector.extract_strided_slice %7 {offsets = [96, 0], sizes = [8, 128], strides = [1, 1]} : vector<120x128xf32> to vector<8x128xf32>
    %21 = vector.extract_strided_slice %7 {offsets = [104, 0], sizes = [8, 128], strides = [1, 1]} : vector<120x128xf32> to vector<8x128xf32>
    %22 = vector.extract_strided_slice %7 {offsets = [112, 0], sizes = [8, 128], strides = [1, 1]} : vector<120x128xf32> to vector<8x128xf32>
    %23 = arith.minimumf %8, %9 : vector<8x128xf32>
    %24 = arith.maximumf %8, %9 : vector<8x128xf32>
    %25 = arith.minimumf %24, %10 : vector<8x128xf32>
    %26 = arith.maximumf %24, %10 : vector<8x128xf32>
    %27 = arith.minimumf %26, %11 : vector<8x128xf32>
    %28 = arith.maximumf %26, %11 : vector<8x128xf32>
    %29 = arith.minimumf %28, %12 : vector<8x128xf32>
    %30 = arith.maximumf %28, %12 : vector<8x128xf32>
    %31 = arith.minimumf %30, %13 : vector<8x128xf32>
    %32 = arith.maximumf %30, %13 : vector<8x128xf32>
    %33 = arith.minimumf %32, %14 : vector<8x128xf32>
    %34 = arith.maximumf %32, %14 : vector<8x128xf32>
    %35 = arith.minimumf %34, %15 : vector<8x128xf32>
    %36 = arith.maximumf %34, %15 : vector<8x128xf32>
    %37 = arith.minimumf %36, %16 : vector<8x128xf32>
    %38 = arith.maximumf %36, %16 : vector<8x128xf32>
    %39 = arith.minimumf %38, %17 : vector<8x128xf32>
    %40 = arith.maximumf %38, %17 : vector<8x128xf32>
    %41 = arith.minimumf %40, %18 : vector<8x128xf32>
    %42 = arith.maximumf %40, %18 : vector<8x128xf32>
    %43 = arith.minimumf %42, %19 : vector<8x128xf32>
    %44 = arith.maximumf %42, %19 : vector<8x128xf32>
    %45 = arith.minimumf %44, %20 : vector<8x128xf32>
    %46 = arith.maximumf %44, %20 : vector<8x128xf32>
    %47 = arith.minimumf %46, %21 : vector<8x128xf32>
    %48 = arith.maximumf %46, %21 : vector<8x128xf32>
    %49 = arith.minimumf %48, %22 : vector<8x128xf32>
    %50 = arith.minimumf %23, %25 : vector<8x128xf32>
    %51 = arith.maximumf %23, %25 : vector<8x128xf32>
    %52 = arith.minimumf %51, %27 : vector<8x128xf32>
    %53 = arith.maximumf %51, %27 : vector<8x128xf32>
    %54 = arith.minimumf %53, %29 : vector<8x128xf32>
    %55 = arith.maximumf %53, %29 : vector<8x128xf32>
    %56 = arith.minimumf %55, %31 : vector<8x128xf32>
    %57 = arith.maximumf %55, %31 : vector<8x128xf32>
    %58 = arith.minimumf %57, %33 : vector<8x128xf32>
    %59 = arith.maximumf %57, %33 : vector<8x128xf32>
    %60 = arith.minimumf %59, %35 : vector<8x128xf32>
    %61 = arith.maximumf %59, %35 : vector<8x128xf32>
    %62 = arith.minimumf %61, %37 : vector<8x128xf32>
    %63 = arith.maximumf %61, %37 : vector<8x128xf32>
    %64 = arith.minimumf %63, %39 : vector<8x128xf32>
    %65 = arith.maximumf %63, %39 : vector<8x128xf32>
    %66 = arith.minimumf %65, %41 : vector<8x128xf32>
    %67 = arith.maximumf %65, %41 : vector<8x128xf32>
    %68 = arith.minimumf %67, %43 : vector<8x128xf32>
    %69 = arith.maximumf %67, %43 : vector<8x128xf32>
    %70 = arith.minimumf %69, %45 : vector<8x128xf32>
    %71 = arith.maximumf %69, %45 : vector<8x128xf32>
    %72 = arith.minimumf %71, %47 : vector<8x128xf32>
    %73 = arith.maximumf %71, %47 : vector<8x128xf32>
    %74 = arith.minimumf %73, %49 : vector<8x128xf32>
    %75 = arith.minimumf %50, %52 : vector<8x128xf32>
    %76 = arith.maximumf %50, %52 : vector<8x128xf32>
    %77 = arith.minimumf %76, %54 : vector<8x128xf32>
    %78 = arith.maximumf %76, %54 : vector<8x128xf32>
    %79 = arith.minimumf %78, %56 : vector<8x128xf32>
    %80 = arith.maximumf %78, %56 : vector<8x128xf32>
    %81 = arith.minimumf %80, %58 : vector<8x128xf32>
    %82 = arith.maximumf %80, %58 : vector<8x128xf32>
    %83 = arith.minimumf %82, %60 : vector<8x128xf32>
    %84 = arith.maximumf %82, %60 : vector<8x128xf32>
    %85 = arith.minimumf %84, %62 : vector<8x128xf32>
    %86 = arith.maximumf %84, %62 : vector<8x128xf32>
    %87 = arith.minimumf %86, %64 : vector<8x128xf32>
    %88 = arith.maximumf %86, %64 : vector<8x128xf32>
    %89 = arith.minimumf %88, %66 : vector<8x128xf32>
    %90 = arith.maximumf %88, %66 : vector<8x128xf32>
    %91 = arith.minimumf %90, %68 : vector<8x128xf32>
    %92 = arith.maximumf %90, %68 : vector<8x128xf32>
    %93 = arith.minimumf %92, %70 : vector<8x128xf32>
    %94 = arith.maximumf %92, %70 : vector<8x128xf32>
    %95 = arith.minimumf %94, %72 : vector<8x128xf32>
    %96 = arith.maximumf %94, %72 : vector<8x128xf32>
    %97 = arith.minimumf %96, %74 : vector<8x128xf32>
    %98 = arith.minimumf %75, %77 : vector<8x128xf32>
    %99 = arith.maximumf %75, %77 : vector<8x128xf32>
    %100 = arith.minimumf %99, %79 : vector<8x128xf32>
    %101 = arith.maximumf %99, %79 : vector<8x128xf32>
    %102 = arith.minimumf %101, %81 : vector<8x128xf32>
    %103 = arith.maximumf %101, %81 : vector<8x128xf32>
    %104 = arith.minimumf %103, %83 : vector<8x128xf32>
    %105 = arith.maximumf %103, %83 : vector<8x128xf32>
    %106 = arith.minimumf %105, %85 : vector<8x128xf32>
    %107 = arith.maximumf %105, %85 : vector<8x128xf32>
    %108 = arith.minimumf %107, %87 : vector<8x128xf32>
    %109 = arith.maximumf %107, %87 : vector<8x128xf32>
    %110 = arith.minimumf %109, %89 : vector<8x128xf32>
    %111 = arith.maximumf %109, %89 : vector<8x128xf32>
    %112 = arith.minimumf %111, %91 : vector<8x128xf32>
    %113 = arith.maximumf %111, %91 : vector<8x128xf32>
    %114 = arith.minimumf %113, %93 : vector<8x128xf32>
    %115 = arith.maximumf %113, %93 : vector<8x128xf32>
    %116 = arith.minimumf %115, %95 : vector<8x128xf32>
    %117 = arith.maximumf %115, %95 : vector<8x128xf32>
    %118 = arith.minimumf %117, %97 : vector<8x128xf32>
    %119 = arith.minimumf %98, %100 : vector<8x128xf32>
    %120 = arith.maximumf %98, %100 : vector<8x128xf32>
    %121 = arith.minimumf %120, %102 : vector<8x128xf32>
    %122 = arith.maximumf %120, %102 : vector<8x128xf32>
    %123 = arith.minimumf %122, %104 : vector<8x128xf32>
    %124 = arith.maximumf %122, %104 : vector<8x128xf32>
    %125 = arith.minimumf %124, %106 : vector<8x128xf32>
    %126 = arith.maximumf %124, %106 : vector<8x128xf32>
    %127 = arith.minimumf %126, %108 : vector<8x128xf32>
    %128 = arith.maximumf %126, %108 : vector<8x128xf32>
    %129 = arith.minimumf %128, %110 : vector<8x128xf32>
    %130 = arith.maximumf %128, %110 : vector<8x128xf32>
    %131 = arith.minimumf %130, %112 : vector<8x128xf32>
    %132 = arith.maximumf %130, %112 : vector<8x128xf32>
    %133 = arith.minimumf %132, %114 : vector<8x128xf32>
    %134 = arith.maximumf %132, %114 : vector<8x128xf32>
    %135 = arith.minimumf %134, %116 : vector<8x128xf32>
    %136 = arith.maximumf %134, %116 : vector<8x128xf32>
    %137 = arith.minimumf %136, %118 : vector<8x128xf32>
    %138 = arith.minimumf %119, %121 : vector<8x128xf32>
    %139 = arith.maximumf %119, %121 : vector<8x128xf32>
    %140 = arith.minimumf %139, %123 : vector<8x128xf32>
    %141 = arith.maximumf %139, %123 : vector<8x128xf32>
    %142 = arith.minimumf %141, %125 : vector<8x128xf32>
    %143 = arith.maximumf %141, %125 : vector<8x128xf32>
    %144 = arith.minimumf %143, %127 : vector<8x128xf32>
    %145 = arith.maximumf %143, %127 : vector<8x128xf32>
    %146 = arith.minimumf %145, %129 : vector<8x128xf32>
    %147 = arith.maximumf %145, %129 : vector<8x128xf32>
    %148 = arith.minimumf %147, %131 : vector<8x128xf32>
    %149 = arith.maximumf %147, %131 : vector<8x128xf32>
    %150 = arith.minimumf %149, %133 : vector<8x128xf32>
    %151 = arith.maximumf %149, %133 : vector<8x128xf32>
    %152 = arith.minimumf %151, %135 : vector<8x128xf32>
    %153 = arith.maximumf %151, %135 : vector<8x128xf32>
    %154 = arith.minimumf %153, %137 : vector<8x128xf32>
    %155 = arith.minimumf %138, %140 : vector<8x128xf32>
    %156 = arith.maximumf %138, %140 : vector<8x128xf32>
    %157 = arith.minimumf %156, %142 : vector<8x128xf32>
    %158 = arith.maximumf %156, %142 : vector<8x128xf32>
    %159 = arith.minimumf %158, %144 : vector<8x128xf32>
    %160 = arith.maximumf %158, %144 : vector<8x128xf32>
    %161 = arith.minimumf %160, %146 : vector<8x128xf32>
    %162 = arith.maximumf %160, %146 : vector<8x128xf32>
    %163 = arith.minimumf %162, %148 : vector<8x128xf32>
    %164 = arith.maximumf %162, %148 : vector<8x128xf32>
    %165 = arith.minimumf %164, %150 : vector<8x128xf32>
    %166 = arith.maximumf %164, %150 : vector<8x128xf32>
    %167 = arith.minimumf %166, %152 : vector<8x128xf32>
    %168 = arith.maximumf %166, %152 : vector<8x128xf32>
    %169 = arith.minimumf %168, %154 : vector<8x128xf32>
    %170 = arith.maximumf %155, %157 : vector<8x128xf32>
    %171 = arith.maximumf %170, %159 : vector<8x128xf32>
    %172 = arith.maximumf %171, %161 : vector<8x128xf32>
    %173 = arith.maximumf %172, %163 : vector<8x128xf32>
    %174 = arith.maximumf %173, %165 : vector<8x128xf32>
    %175 = arith.maximumf %174, %167 : vector<8x128xf32>
    %176 = arith.maximumf %175, %169 : vector<8x128xf32>
    %c0_3 = arith.constant 0 : index
    %c0_4 = arith.constant 0 : index
    %177 = vector.load %arg3[%c0_3, %c0_4] : memref<256x128xf32, #tpu.memory_space<vmem>>, vector<128x128xf32>
    %cst_5 = arith.constant dense<0.000000e+00> : vector<8x128xf32>
    %178 = tpu.matmul %176, %177, %cst_5 {dimension_numbers = #tpu.dot_dimension_numbers<[1], [0], [0], [1], [0, 0, 1, 1], [], []>} : vector<8x128xf32>, vector<128x128xf32>, vector<8x128xf32> -> vector<8x128xf32>
    %cst_6 = arith.constant 0.000000e+00 : f32
    %179 = vector.broadcast %cst_6 : f32 to vector<8x128xf32>
    %180 = arith.cmpf ogt, %178, %179 : vector<8x128xf32>
    %cst_7 = arith.constant 9.99999935E-39 : f32
    %181 = vector.broadcast %cst_7 : f32 to vector<8x128xf32>
    %182 = arith.maximumf %178, %181 : vector<8x128xf32>
    %183 = math.rsqrt %182 : vector<8x128xf32>
    %cst_8 = arith.constant 0.000000e+00 : f32
    %184 = vector.broadcast %cst_8 : f32 to vector<8x128xf32>
    %185 = arith.select %180, %183, %184 : vector<8x128xi1>, vector<8x128xf32>
    %c128 = arith.constant 128 : index
    %c0_9 = arith.constant 0 : index
    %186 = vector.load %arg3[%c128, %c0_9] : memref<256x128xf32, #tpu.memory_space<vmem>>, vector<128x128xf32>
    %cst_10 = arith.constant dense<0.000000e+00> : vector<8x128xf32>
    %187 = tpu.matmul %185, %186, %cst_10 {dimension_numbers = #tpu.dot_dimension_numbers<[1], [0], [0], [1], [0, 0, 1, 1], [], []>} : vector<8x128xf32>, vector<128x128xf32>, vector<8x128xf32> -> vector<8x128xf32>
    %c0_11 = arith.constant 0 : index
    %c0_12 = arith.constant 0 : index
    %188 = vector.load %arg1[%c0_11, %c0_12] : memref<8x256xf32, #tpu.memory_space<vmem>>, vector<8x256xf32>
    %c0_13 = arith.constant 0 : index
    %c0_14 = arith.constant 0 : index
    %189 = vector.load %arg4[%c0_13, %c0_14] : memref<256x256xf32, #tpu.memory_space<vmem>>, vector<256x256xf32>
    %cst_15 = arith.constant dense<0.000000e+00> : vector<8x256xf32>
    %190 = tpu.matmul %188, %189, %cst_15 {dimension_numbers = #tpu.dot_dimension_numbers<[1], [0], [0], [1], [0, 0, 1, 1], [], []>} : vector<8x256xf32>, vector<256x256xf32>, vector<8x256xf32> -> vector<8x256xf32>
    %191 = tpu.concatenate %187, %187 in 1 : vector<8x128xf32>, vector<8x128xf32> -> vector<8x256xf32>
    %192 = arith.mulf %190, %191 : vector<8x256xf32>
    %c0_16 = arith.constant 0 : index
    %c0_17 = arith.constant 0 : index
    %193 = vector.load %arg5[%c0_16, %c0_17] : memref<256x512xf32, #tpu.memory_space<vmem>>, vector<256x512xf32>
    %cst_18 = arith.constant dense<0.000000e+00> : vector<8x512xf32>
    %194 = tpu.matmul %192, %193, %cst_18 {dimension_numbers = #tpu.dot_dimension_numbers<[1], [0], [0], [1], [0, 0, 1, 1], [], []>} : vector<8x256xf32>, vector<256x512xf32>, vector<8x512xf32> -> vector<8x512xf32>
    %c0_19 = arith.constant 0 : index
    %c0_20 = arith.constant 0 : index
    %195 = vector.load %arg6[%c0_19, %c0_20] : memref<8x512xf32, #tpu.memory_space<vmem>>, vector<8x512xf32>
    tpu.vector_store %arg6[%c0_19, %c0_20], %194 {strides = array<i32>} : memref<8x512xf32, #tpu.memory_space<vmem>>, vector<8x512xf32>,
    return
  }
}

</mosaic_0001>

<bundles_post_ra>
// kernel: batch_whitener_forward.1
= control target key start
LH: loop header
LB: loop body
LE: loop exit
PB: predicated region body
PF: predicated region fallthrough
CT: control target
= control target key end

     0   :  { %v1428_v3 = vmov 0.0   ;;  %vm54_vm0 = vcmask 523264   ;;  %v1429_v43 = vmov 0.0|0.0   ;;  %vm1430_vm1 = vmmov 0   ;;  %s2314_s2 = inlined_call_operand.vmem [shape: f32[64,256], index: 2, kind: input, shape index: {}]   ;;  %s2315_s0 = inlined_call_operand.vmem [shape: f32[120,64], index: 0, kind: input, shape index: {}]   ;;  %s2316_s3 = inlined_call_operand.vmem [shape: f32[256,128], index: 3, kind: input, shape index: {}]   ;;  %s2317_s4 = inlined_call_operand.vmem [shape: f32[256,256], index: 4, kind: input, shape index: {}]   ;;  %s2318_s1 = inlined_call_operand.vmem [shape: f32[8,256], index: 1, kind: input, shape index: {}]   ;;  %s2319_s5 = inlined_call_operand.vmem [shape: f32[256,512], index: 5, kind: input, shape index: {}]   ;;  %s2320_s6 = inlined_call_operand.vmem [shape: f32[8,512], index: 6, kind: output, shape index: {}]  }
   0x1   :  { %v39_v0 = vld [vmem:[%s2314_s2 + $0x8] sm:$0xff]  ;;  %v41_v1 = vld [vmem:[%s2314_s2 + $0x18] sm:$0xff]  ;;  %v38_v2 = vld [vmem:[%s2314_s2] sm:$0xff]  ;;  %164 = vmatprep.mubr.f32.mxu0 %v1428_v3  ;;  %1183 = vmatprep.subr.bf16.mxu1 %v1429_v43 }
   0x2   :  { %v1167_v4 = vpack.c.bf16 %v41_v1, %v39_v0  ;;  %v40_v5 = vld [vmem:[%s2314_s2 + $0x10] sm:$0xff]  ;;  %v43_v6 = vld [vmem:[%s2314_s2 + $0x28] sm:$0xff]  ;;  %v45_v7 = vld [vmem:[%s2314_s2 + $0x38] sm:$0xff]  ;;  %1129 = vmatprep.mubr.msk.f32.mxu1 %vm1430_vm1, %v1428_v3 }
   0x3   :  { %v1169_v8 = vpack.c.bf16 %v40_v5, %v38_v2  ;;  %v1171_v9 = vpack.c.bf16 %v45_v7, %v43_v6  ;;  %v42_v10 = vld [vmem:[%s2314_s2 + $0x20] sm:$0xff]  ;;  %v44_v11 = vld [vmem:[%s2314_s2 + $0x30] sm:$0xff]  ;;  %v47_v12 = vld [vmem:[%s2314_s2 + $0x48] sm:$0xff] }
   0x4   :  { %1168 = vmatprep.subr.bf16.mxu0 %v1167_v4  ;;  %v49_v13 = vld [vmem:[%s2314_s2 + $0x58] sm:$0xff]  ;;  %v1173_v14 = vpack.c.bf16 %v44_v11, %v42_v10  ;;  %v46_v16 = vld [vmem:[%s2314_s2 + $0x40] sm:$0xff]  ;;  %v48_v17 = vld [vmem:[%s2314_s2 + $0x50] sm:$0xff] }
   0x5   :  { %1170 = vmatpush1.bf16.msra.mxu0 %v1169_v8  ;;  %v1175_v15 = vpack.c.bf16 %v49_v13, %v47_v12  ;;  %v51_v18 = vld [vmem:[%s2314_s2 + $0x68] sm:$0xff]  ;;  %v53_v19 = vld [vmem:[%s2314_s2 + $0x78] sm:$0xff]  ;;  %v1177_v20 = vpack.c.bf16 %v48_v17, %v46_v16  ;;  %v50_v22 = vld [vmem:[%s2314_s2 + $0x60] sm:$0xff] }
   0x6   :  { %1172 = vmatprep.subr.bf16.mxu0 %v1171_v9  ;;  %v1179_v21 = vpack.c.bf16 %v53_v19, %v51_v18  ;;  %v52_v23 = vld [vmem:[%s2314_s2 + $0x70] sm:$0xff]  ;;  %v23_v25 = vld [vmem:[%s2315_s0] sm:$0xff]  ;;  %v24_v26 = vld [vmem:[%s2315_s0 + $0x8] sm:$0xff] }
   0x7   :  { %v1181_v24 = vpack.c.bf16 %v52_v23, %v50_v22  ;;  %v25_v27 = vld [vmem:[%s2315_s0 + $0x10] sm:$0xff]  ;;  %v26_v28 = vld [vmem:[%s2315_s0 + $0x18] sm:$0xff]  ;;  %v27_v29 = vld [vmem:[%s2315_s0 + $0x20] sm:$0xff] }
   0x8   :  { %v28_v30 = vld [vmem:[%s2315_s0 + $0x28] sm:$0xff]  ;;  %v29_v31 = vld [vmem:[%s2315_s0 + $0x30] sm:$0xff]  ;;  %v30_v32 = vld [vmem:[%s2315_s0 + $0x38] sm:$0xff] }
   0x9   :  { %1174 = vmatpush1.bf16.msra.mxu0 %v1173_v14  ;;  %v31_v33 = vld [vmem:[%s2315_s0 + $0x40] sm:$0xff]  ;;  %v32_v34 = vld [vmem:[%s2315_s0 + $0x48] sm:$0xff]  ;;  %v33_v35 = vld [vmem:[%s2315_s0 + $0x50] sm:$0xff] }
   0xa   :  { %1176 = vmatprep.subr.bf16.mxu0 %v1175_v15  ;;  %v34_v36 = vld [vmem:[%s2315_s0 + $0x58] sm:$0xff]  ;;  %v35_v37 = vld [vmem:[%s2315_s0 + $0x60] sm:$0xff]  ;;  %v36_v38 = vld [vmem:[%s2315_s0 + $0x68] sm:$0xff] }
   0xb   :  { %v37_v39 = vld [vmem:[%s2315_s0 + $0x70] sm:$0xff]  ;;  %v454_v40 = vld [vmem:[%s2316_s3] sm:$0xff]  ;;  %v455_v41 = vld [vmem:[%s2316_s3 + $0x8] sm:$0xff] }
   0xc   :  { %v1184_v42 = vpack.c.bf16 %v455_v41, %v454_v40  ;;  %v456_v44 = vld [vmem:[%s2316_s3 + $0x10] sm:$0xff]  ;;  %v457_v45 = vld [vmem:[%s2316_s3 + $0x18] sm:$0xff]  ;;  %v458_v47 = vld [vmem:[%s2316_s3 + $0x20] sm:$0xff] }
   0xd   :  { %1178 = vmatpush1.bf16.msra.mxu0 %v1177_v20  ;;  %v1187_v46 = vpack.c.bf16 %v457_v45, %v456_v44  ;;  %v459_v48 = vld [vmem:[%s2316_s3 + $0x28] sm:$0xff]  ;;  %v460_v50 = vld [vmem:[%s2316_s3 + $0x30] sm:$0xff]  ;;  %v461_v51 = vld [vmem:[%s2316_s3 + $0x38] sm:$0xff] }
   0xe   :  { %1180 = vmatprep.subr.bf16.mxu0 %v1179_v21  ;;  %1185 = vmatpush3.bf16.msra.mxu1 %v1184_v42  ;;  %v1190_v49 = vpack.c.bf16 %v459_v48, %v458_v47  ;;  %v1193_v52 = vpack.c.bf16 %v461_v51, %v460_v50  ;;  %v462_v53 = vld [vmem:[%s2316_s3 + $0x40] sm:$0xff]  ;;  %v463_v54 = vld [vmem:[%s2316_s3 + $0x48] sm:$0xff]  ;;  %v464_v56 = vld [vmem:[%s2316_s3 + $0x50] sm:$0xff] }
   0xf   :  { %1186 = vmatprep.subr.bf16.mxu1 %v1429_v43  ;;  %v1196_v55 = vpack.c.bf16 %v463_v54, %v462_v53  ;;  %v465_v57 = vld [vmem:[%s2316_s3 + $0x58] sm:$0xff]  ;;  %v466_v59 = vld [vmem:[%s2316_s3 + $0x60] sm:$0xff]  ;;  %v467_v60 = vld [vmem:[%s2316_s3 + $0x68] sm:$0xff] }
  0x10   :  { %v1199_v58 = vpack.c.bf16 %v465_v57, %v464_v56  ;;  %v1202_v61 = vpack.c.bf16 %v467_v60, %v466_v59  ;;  %v468_v62 = vld [vmem:[%s2316_s3 + $0x70] sm:$0xff]  ;;  %v469_v63 = vld [vmem:[%s2316_s3 + $0x78] sm:$0xff]  ;;  %v633_v1 = vld [vmem:[%s2317_s4 + $0x8] sm:$0xff] }
  0x11   :  { %1182 = vmatpush1.bf16.msra.mxu0 %v1181_v24  ;;  %v1205_v0 = vpack.c.bf16 %v469_v63, %v468_v62  ;;  %v635_v2 = vld [vmem:[%s2317_s4 + $0x18] sm:$0xff]  ;;  %v632_v4 = vld [vmem:[%s2317_s4] sm:$0xff]  ;;  %v634_v6 = vld [vmem:[%s2317_s4 + $0x10] sm:$0xff] }
  0x12   :  { %1188 = vmatpush3.bf16.msra.mxu1 %v1187_v46  ;;  %v1231_v5 = vpack.c.bf16 %v635_v2, %v633_v1  ;;  %v637_v7 = vld [vmem:[%s2317_s4 + $0x28] sm:$0xff]  ;;  %v639_v8 = vld [vmem:[%s2317_s4 + $0x38] sm:$0xff]  ;;  %v1233_v9 = vpack.c.bf16 %v634_v6, %v632_v4  ;;  %v636_v11 = vld [vmem:[%s2317_s4 + $0x20] sm:$0xff] }
  0x13   :  { %1189 = vmatprep.subr.bf16.mxu1 %v1429_v43  ;;  %v1235_v10 = vpack.c.bf16 %v639_v8, %v637_v7  ;;  %v638_v12 = vld [vmem:[%s2317_s4 + $0x30] sm:$0xff]  ;;  %v641_v13 = vld [vmem:[%s2317_s4 + $0x48] sm:$0xff]  ;;  %v643_v14 = vld [vmem:[%s2317_s4 + $0x58] sm:$0xff] }
  0x14   :  { %1047 = vmatmul.mubr.msk.f32.vlgmr.msra.gmra.mrb[0].mxu0 %vm54_vm0, %v23_v25  ;;  %1232 = vmatprep.subr.bf16.mxu0 %v1231_v5  ;;  %v1237_v15 = vpack.c.bf16 %v638_v12, %v636_v11  ;;  %v1239_v16 = vpack.c.bf16 %v643_v14, %v641_v13  ;;  %v640_v17 = vld [vmem:[%s2317_s4 + $0x40] sm:$0xff]  ;;  %v642_v18 = vld [vmem:[%s2317_s4 + $0x50] sm:$0xff]  ;;  %v645_v19 = vld [vmem:[%s2317_s4 + $0x68] sm:$0xff] }
  0x15   :  { %170 = vmatprep.mubr.f32.mxu0 %v1428_v3  ;;  %1234 = vmatpush1.bf16.msra.mxu0 %v1233_v9  ;;  %v647_v20 = vld [vmem:[%s2317_s4 + $0x78] sm:$0xff]  ;;  %v1241_v21 = vpack.c.bf16 %v642_v18, %v640_v17  ;;  %v644_v23 = vld [vmem:[%s2317_s4 + $0x60] sm:$0xff]  ;;  %v646_v24 = vld [vmem:[%s2317_s4 + $0x70] sm:$0xff] }
  0x16   :  { %1191 = vmatpush3.bf16.msra.mxu1 %v1190_v49  ;;  %1236 = vmatprep.subr.bf16.mxu0 %v1235_v10  ;;  %v1243_v22 = vpack.c.bf16 %v647_v20, %v645_v19  ;;  %v649_v25 = vld [vmem:[%s2317_s4 + $0x88] sm:$0xff]  ;;  %v656_v41 = vld [vmem:[%s2317_s4 + $0xc0] sm:$0xff]  ;;  %v658_v42 = vld [vmem:[%s2317_s4 + $0xd0] sm:$0xff] }
  0x17   :  { %1192 = vmatprep.subr.bf16.mxu1 %v1429_v43  ;;  %v661_v44 = vld [vmem:[%s2317_s4 + $0xe8] sm:$0xff]  ;;  %v663_v45 = vld [vmem:[%s2317_s4 + $0xf8] sm:$0xff]  ;;  %v1257_v46 = vpack.c.bf16 %v658_v42, %v656_v41  ;;  %v660_v48 = vld [vmem:[%s2317_s4 + $0xe0] sm:$0xff] }
  0x18   :  { %1048 = vmatmul.mubr.msk.f32.gmra.mrb[2].mxu0 %vm54_vm0, %v24_v26  ;;  %v651_v26 = vld [vmem:[%s2317_s4 + $0x98] sm:$0xff]  ;;  %v1259_v47 = vpack.c.bf16 %v663_v45, %v661_v44  ;;  %v662_v49 = vld [vmem:[%s2317_s4 + $0xf0] sm:$0xff]  ;;  %v665_v50 = vld [vmem:[%s2317_s4 + $0x108] sm:$0xff] }
  0x19   :  { %176 = vmatprep.mubr.f32.mxu0 %v1428_v3  ;;  %1238 = vmatpush1.bf16.msra.mxu0 %v1237_v15  ;;  %v667_v51 = vld [vmem:[%s2317_s4 + $0x118] sm:$0xff]  ;;  %v664_v54 = vld [vmem:[%s2317_s4 + $0x100] sm:$0xff]  ;;  %v669_v56 = vld [vmem:[%s2317_s4 + $0x128] sm:$0xff] }
  0x1a   :  { %1194 = vmatpush3.bf16.msra.mxu1 %v1193_v52  ;;  %1240 = vmatprep.subr.bf16.mxu0 %v1239_v16  ;;  %v1261_v52 = vpack.c.bf16 %v662_v49, %v660_v48  ;;  %v1263_v53 = vpack.c.bf16 %v667_v51, %v665_v50  ;;  %v671_v57 = vld [vmem:[%s2317_s4 + $0x138] sm:$0xff]  ;;  %v668_v60 = vld [vmem:[%s2317_s4 + $0x120] sm:$0xff]  ;;  %v673_v62 = vld [vmem:[%s2317_s4 + $0x148] sm:$0xff] }
  0x1b   :  { %1195 = vmatprep.subr.bf16.mxu1 %v1429_v43  ;;  %v1267_v59 = vpack.c.bf16 %v671_v57, %v669_v56  ;;  %v675_v63 = vld [vmem:[%s2317_s4 + $0x158] sm:$0xff]  ;;  %v672_v2 = vld [vmem:[%s2317_s4 + $0x140] sm:$0xff]  ;;  %v674_v4 = vld [vmem:[%s2317_s4 + $0x150] sm:$0xff] }
  0x1c   :  { %1049 = vmatmul.mubr.msk.f32.gmra.mrb[4].mxu0 %vm54_vm0, %v25_v27  ;;  %v1245_v27 = vpack.c.bf16 %v646_v24, %v644_v23  ;;  %v1271_v1 = vpack.c.bf16 %v675_v63, %v673_v62  ;;  %v677_v5 = vld [vmem:[%s2317_s4 + $0x168] sm:$0xff]  ;;  %v679_v6 = vld [vmem:[%s2317_s4 + $0x178] sm:$0xff]  ;;  %v1273_v7 = vpack.c.bf16 %v674_v4, %v672_v2  ;;  %v676_v9 = vld [vmem:[%s2317_s4 + $0x160] sm:$0xff] }
  0x1d   :  { %182 = vmatprep.mubr.f32.mxu0 %v1428_v3  ;;  %1242 = vmatpush1.bf16.msra.mxu0 %v1241_v21  ;;  %v1275_v8 = vpack.c.bf16 %v679_v6, %v677_v5  ;;  %v678_v10 = vld [vmem:[%s2317_s4 + $0x170] sm:$0xff]  ;;  %v681_v11 = vld [vmem:[%s2317_s4 + $0x188] sm:$0xff]  ;;  %v683_v12 = vld [vmem:[%s2317_s4 + $0x198] sm:$0xff] }
  0x1e   :  { %1197 = vmatpush3.bf16.msra.mxu1 %v1196_v55  ;;  %1244 = vmatprep.subr.bf16.mxu0 %v1243_v22  ;;  %v666_v55 = vld [vmem:[%s2317_s4 + $0x110] sm:$0xff]  ;;  %v1277_v13 = vpack.c.bf16 %v678_v10, %v676_v9  ;;  %v1279_v14 = vpack.c.bf16 %v683_v12, %v681_v11  ;;  %v680_v15 = vld [vmem:[%s2317_s4 + $0x180] sm:$0xff] }
  0x1f   :  { %1198 = vmatprep.subr.bf16.mxu1 %v1429_v43  ;;  %v682_v16 = vld [vmem:[%s2317_s4 + $0x190] sm:$0xff] }
  0x20   :  { %1050 = vmatmul.mubr.msk.f32.gmra.mrb[6].mxu0 %vm54_vm0, %v26_v28  ;;  %v1247_v28 = vpack.c.bf16 %v651_v26, %v649_v25  ;;  %v1281_v17 = vpack.c.bf16 %v682_v16, %v680_v15 }
  0x21   :  { %188 = vmatprep.mubr.f32.mxu0 %v1428_v3  ;;  %1246 = vmatpush1.bf16.msra.mxu0 %v1245_v27 }
  0x22   :  { %1200 = vmatpush3.bf16.msra.mxu1 %v1199_v58  ;;  %1248 = vmatprep.subr.bf16.mxu0 %v1247_v28  ;;  %v1265_v58 = vpack.c.bf16 %v666_v55, %v664_v54 }
  0x23   :  { %1201 = vmatprep.subr.bf16.mxu1 %v1429_v43 }
  0x24   :  { %1051 = vmatmul.mubr.msk.f32.gmra.mrb[8].mxu0 %vm54_vm0, %v27_v29  ;;  %v648_v29 = vld [vmem:[%s2317_s4 + $0x80] sm:$0xff] }
  0x25   :  { %194 = vmatprep.mubr.f32.mxu0 %v1428_v3 }
  0x26   :  { %1203 = vmatpush3.bf16.msra.mxu1 %v1202_v61  ;;  %v670_v61 = vld [vmem:[%s2317_s4 + $0x130] sm:$0xff] }
  0x27   :  { %1204 = vmatprep.subr.bf16.mxu1 %v1429_v43 }
  0x28   :  { %1052 = vmatmul.mubr.msk.f32.gmra.mrb[10].mxu0 %vm54_vm0, %v28_v30  ;;  %v650_v30 = vld [vmem:[%s2317_s4 + $0x90] sm:$0xff] }
  0x29   :  { %200 = vmatprep.mubr.f32.mxu0 %v1428_v3 }
  0x2a   :  { %1206 = vmatpush3.bf16.msra.mxu1 %v1205_v0  ;;  %v1269_v0 = vpack.c.bf16 %v670_v61, %v668_v60 }
  0x2b   :  { %1207 = vmatprep.subr.bf16.mxu1 %v1429_v43 }
  0x2c   :  { %1053 = vmatmul.mubr.msk.f32.gmra.mrb[12].mxu0 %vm54_vm0, %v29_v31  ;;  %v653_v31 = vld [vmem:[%s2317_s4 + $0xa8] sm:$0xff] }
  0x2d   :  { %206 = vmatprep.mubr.f32.mxu0 %v1428_v3 }
  0x30   :  { %1054 = vmatmul.mubr.msk.f32.gmra.mrb[14].mxu0 %vm54_vm0, %v30_v32  ;;  %v655_v32 = vld [vmem:[%s2317_s4 + $0xb8] sm:$0xff] }
  0x31   :  { %212 = vmatprep.mubr.f32.mxu0 %v1428_v3 }
  0x34   :  { %1055 = vmatmul.mubr.msk.f32.gmra.mrb[16].mxu0 %vm54_vm0, %v31_v33  ;;  %v1249_v33 = vpack.c.bf16 %v650_v30, %v648_v29 }
  0x35   :  { %218 = vmatprep.mubr.f32.mxu0 %v1428_v3 }
  0x36   :  { %1250 = vmatpush1.bf16.msra.mxu0 %v1249_v33 }
  0x38   :  { %1056 = vmatmul.mubr.msk.f32.gmra.mrb[18].mxu0 %vm54_vm0, %v32_v34  ;;  %v1251_v34 = vpack.c.bf16 %v655_v32, %v653_v31 }
  0x39   :  { %224 = vmatprep.mubr.f32.mxu0 %v1428_v3 }
  0x3a   :  { %1252 = vmatprep.subr.bf16.mxu0 %v1251_v34 }
  0x3c   :  { %1057 = vmatmul.mubr.msk.f32.gmra.mrb[20].mxu0 %vm54_vm0, %v33_v35  ;;  %v652_v35 = vld [vmem:[%s2317_s4 + $0xa0] sm:$0xff] }
  0x3d   :  { %230 = vmatprep.mubr.f32.mxu0 %v1428_v3 }
  0x40   :  { %1058 = vmatmul.mubr.msk.f32.gmra.mrb[22].mxu0 %vm54_vm0, %v34_v36  ;;  %v654_v36 = vld [vmem:[%s2317_s4 + $0xb0] sm:$0xff] }
  0x41   :  { %236 = vmatprep.mubr.f32.mxu0 %v1428_v3 }
  0x44   :  { %1059 = vmatmul.mubr.msk.f32.gmra.mrb[24].mxu0 %vm54_vm0, %v35_v37  ;;  %v657_v37 = vld [vmem:[%s2317_s4 + $0xc8] sm:$0xff] }
  0x45   :  { %242 = vmatprep.mubr.f32.mxu0 %v1428_v3 }
  0x48   :  { %1060 = vmatmul.mubr.msk.f32.gmra.mrb[26].mxu0 %vm54_vm0, %v36_v38  ;;  %v659_v38 = vld [vmem:[%s2317_s4 + $0xd8] sm:$0xff] }
  0x49   :  { %248 = vmatprep.mubr.f32.mxu0 %v1428_v3  ;;  %v1255_v40 = vpack.c.bf16 %v659_v38, %v657_v37 }
  0x4c   :  { %1061 = vmatmul.mubr.msk.f32.gmra.mrb[28].mxu0 %vm54_vm0, %v37_v39  ;;  %v1253_v39 = vpack.c.bf16 %v654_v36, %v652_v35 }
  0x4e   :  { %1254 = vmatpush1.bf16.msra.mxu0 %v1253_v39 }
  0x4f   :  { %1256 = vmatprep.subr.bf16.mxu0 %v1255_v40 }
  0x52   :  { %1258 = vmatpush1.bf16.msra.mxu0 %v1257_v46 }
  0x53   :  { %1260 = vmatprep.subr.bf16.mxu0 %v1259_v47 }
  0x56   :  { %1262 = vmatpush1.bf16.msra.mxu0 %v1261_v52 }
  0x57   :  { %1264 = vmatprep.subr.bf16.mxu0 %v1263_v53 }
  0x5a   :  { %1266 = vmatpush1.bf16.msra.mxu0 %v1265_v58 }
  0x5b   :  { %1268 = vmatprep.subr.bf16.mxu0 %v1267_v59 }
  0x5e   :  { %1270 = vmatpush1.bf16.msra.mxu0 %v1269_v0 }
  0x5f   :  { %1272 = vmatprep.subr.bf16.mxu0 %v1271_v1 }
  0x62   :  { %1274 = vmatpush1.bf16.msra.mxu0 %v1273_v7 }
  0x63   :  { %1276 = vmatprep.subr.bf16.mxu0 %v1275_v8 }
  0x66   :  { %1278 = vmatpush1.bf16.msra.mxu0 %v1277_v13 }
  0x67   :  { %1280 = vmatprep.subr.bf16.mxu0 %v1279_v14 }
  0x6a   :  { %1282 = vmatpush1.bf16.msra.mxu0 %v1281_v17 }
  0xe7   :  { %v166_v18 = vpop.f32.mrb[0].mxu0 }
  0xe8   :  { %v255_v19 = vmul.f32 %v166_v18, %v166_v18  ;;  %v168_v20 = vpop.f32.mrb[1].mxu0 }
  0xe9   :  { %v270_v21 = vmul.f32 %v168_v20, %v168_v20 }
  0xeb   :  { %v285_v22 = vadd.f32 %v270_v21, %v255_v19  ;;  %v172_v23 = vpop.f32.mrb[2].mxu0 }
  0xec   :  { %v256_v24 = vmul.f32 %v172_v23, %v172_v23  ;;  %v174_v25 = vpop.f32.mrb[3].mxu0 }
  0xed   :  { %v271_v26 = vmul.f32 %v174_v25, %v174_v25 }
  0xef   :  { %v286_v27 = vadd.f32 %v271_v26, %v256_v24  ;;  %v178_v28 = vpop.f32.mrb[4].mxu0 }
  0xf0   :  { %v257_v29 = vmul.f32 %v178_v28, %v178_v28  ;;  %v180_v30 = vpop.f32.mrb[5].mxu0 }
  0xf1   :  { %v300_v31 = vmin.f32 %v285_v22, %v286_v27  ;;  %v301_v32 = vmax.f32 %v285_v22, %v286_v27  ;;  %v272_v33 = vmul.f32 %v180_v30, %v180_v30 }
  0xf3   :  { %v287_v34 = vadd.f32 %v272_v33, %v257_v29  ;;  %v184_v35 = vpop.f32.mrb[6].mxu0 }
  0xf4   :  { %v258_v36 = vmul.f32 %v184_v35, %v184_v35  ;;  %v186_v37 = vpop.f32.mrb[7].mxu0 }
  0xf5   :  { %v302_v38 = vmin.f32 %v301_v32, %v287_v34  ;;  %v303_v39 = vmax.f32 %v301_v32, %v287_v34  ;;  %v273_v40 = vmul.f32 %v186_v37, %v186_v37 }
  0xf7   :  { %v327_v41 = vmin.f32 %v300_v31, %v302_v38  ;;  %v328_v42 = vmax.f32 %v300_v31, %v302_v38  ;;  %v288_v44 = vadd.f32 %v273_v40, %v258_v36  ;;  %v190_v45 = vpop.f32.mrb[8].mxu0 }
  0xf8   :  { %v259_v46 = vmul.f32 %v190_v45, %v190_v45  ;;  %v192_v47 = vpop.f32.mrb[9].mxu0 }
  0xf9   :  { %v304_v48 = vmin.f32 %v303_v39, %v288_v44  ;;  %v305_v49 = vmax.f32 %v303_v39, %v288_v44  ;;  %v274_v50 = vmul.f32 %v192_v47, %v192_v47 }
  0xfb   :  { %v329_v51 = vmin.f32 %v328_v42, %v304_v48  ;;  %v330_v52 = vmax.f32 %v328_v42, %v304_v48  ;;  %v289_v53 = vadd.f32 %v274_v50, %v259_v46  ;;  %v196_v54 = vpop.f32.mrb[10].mxu0 }
  0xfc   :  { %v260_v55 = vmul.f32 %v196_v54, %v196_v54  ;;  %v198_v56 = vpop.f32.mrb[11].mxu0 }
  0xfd   :  { %v352_v57 = vmin.f32 %v327_v41, %v329_v51  ;;  %v353_v58 = vmax.f32 %v327_v41, %v329_v51  ;;  %v306_v59 = vmin.f32 %v305_v49, %v289_v53  ;;  %v307_v60 = vmax.f32 %v305_v49, %v289_v53 }
  0xfe   :  { %v275_v61 = vmul.f32 %v198_v56, %v198_v56 }
  0xff   :  { %v331_v62 = vmin.f32 %v330_v52, %v306_v59  ;;  %v332_v63 = vmax.f32 %v330_v52, %v306_v59  ;;  %v202_v0 = vpop.f32.mrb[12].mxu0 }
 0x100   :  { %v290_v1 = vadd.f32 %v275_v61, %v260_v55  ;;  %v261_v2 = vmul.f32 %v202_v0, %v202_v0  ;;  %v204_v4 = vpop.f32.mrb[13].mxu0 }
 0x101   :  { %v354_v5 = vmin.f32 %v353_v58, %v331_v62  ;;  %v355_v6 = vmax.f32 %v353_v58, %v331_v62  ;;  %v276_v7 = vmul.f32 %v204_v4, %v204_v4 }
 0x102   :  { %v308_v8 = vmin.f32 %v307_v60, %v290_v1  ;;  %v309_v9 = vmax.f32 %v307_v60, %v290_v1 }
 0x103   :  { %v375_v10 = vmin.f32 %v352_v57, %v354_v5  ;;  %v376_v11 = vmax.f32 %v352_v57, %v354_v5  ;;  %v291_v12 = vadd.f32 %v276_v7, %v261_v2  ;;  %v208_v13 = vpop.f32.mrb[14].mxu0 }
 0x104   :  { %v333_v14 = vmin.f32 %v332_v63, %v308_v8  ;;  %v334_v15 = vmax.f32 %v332_v63, %v308_v8  ;;  %v262_v16 = vmul.f32 %v208_v13, %v208_v13  ;;  %v210_v17 = vpop.f32.mrb[15].mxu0 }
 0x105   :  { %v310_v18 = vmin.f32 %v309_v9, %v291_v12  ;;  %v311_v19 = vmax.f32 %v309_v9, %v291_v12  ;;  %v277_v20 = vmul.f32 %v210_v17, %v210_v17 }
 0x106   :  { %v356_v21 = vmin.f32 %v355_v6, %v333_v14  ;;  %v357_v22 = vmax.f32 %v355_v6, %v333_v14 }
 0x107   :  { %v335_v23 = vmin.f32 %v334_v15, %v310_v18  ;;  %v336_v24 = vmax.f32 %v334_v15, %v310_v18  ;;  %v292_v25 = vadd.f32 %v277_v20, %v262_v16  ;;  %v214_v26 = vpop.f32.mrb[16].mxu0 }
 0x108   :  { %v377_v27 = vmin.f32 %v376_v11, %v356_v21  ;;  %v378_v28 = vmax.f32 %v376_v11, %v356_v21  ;;  %v263_v29 = vmul.f32 %v214_v26, %v214_v26  ;;  %v216_v30 = vpop.f32.mrb[17].mxu0 }
 0x109   :  { %v358_v31 = vmin.f32 %v357_v22, %v335_v23  ;;  %v359_v32 = vmax.f32 %v357_v22, %v335_v23  ;;  %v312_v33 = vmin.f32 %v311_v19, %v292_v25  ;;  %v313_v34 = vmax.f32 %v311_v19, %v292_v25 }
 0x10a   :  { %v396_v35 = vmin.f32 %v375_v10, %v377_v27  ;;  %v397_v36 = vmax.f32 %v375_v10, %v377_v27  ;;  %v278_v37 = vmul.f32 %v216_v30, %v216_v30 }
 0x10b   :  { %v379_v38 = vmin.f32 %v378_v28, %v358_v31  ;;  %v380_v39 = vmax.f32 %v378_v28, %v358_v31  ;;  %v337_v40 = vmin.f32 %v336_v24, %v312_v33  ;;  %v338_v41 = vmax.f32 %v336_v24, %v312_v33  ;;  %v220_v42 = vpop.f32.mrb[18].mxu0 }
 0x10c   :  { %v293_v44 = vadd.f32 %v278_v37, %v263_v29  ;;  %v264_v45 = vmul.f32 %v220_v42, %v220_v42  ;;  %v222_v46 = vpop.f32.mrb[19].mxu0 }
 0x10d   :  { %v398_v47 = vmin.f32 %v397_v36, %v379_v38  ;;  %v399_v48 = vmax.f32 %v397_v36, %v379_v38  ;;  %v360_v49 = vmin.f32 %v359_v32, %v337_v40  ;;  %v361_v50 = vmax.f32 %v359_v32, %v337_v40 }
 0x10e   :  { %v314_v51 = vmin.f32 %v313_v34, %v293_v44  ;;  %v315_v52 = vmax.f32 %v313_v34, %v293_v44  ;;  %v279_v53 = vmul.f32 %v222_v46, %v222_v46 }
 0x10f   :  { %v1804_v54 = vmin.f32 %v396_v35, %v398_v47  ;;  %v416_v55 = vmax.f32 %v396_v35, %v398_v47  ;;  %v381_v56 = vmin.f32 %v380_v39, %v360_v49  ;;  %v382_v57 = vmax.f32 %v380_v39, %v360_v49  ;;  %v226_v58 = vpop.f32.mrb[20].mxu0 }
 0x110   :  { %v339_v59 = vmin.f32 %v338_v41, %v314_v51  ;;  %v340_v60 = vmax.f32 %v338_v41, %v314_v51  ;;  %v294_v61 = vadd.f32 %v279_v53, %v264_v45  ;;  %v265_v62 = vmul.f32 %v226_v58, %v226_v58  ;;  %v228_v63 = vpop.f32.mrb[21].mxu0 }
 0x111   :  { %v400_v0 = vmin.f32 %v399_v48, %v381_v56  ;;  %v401_v1 = vmax.f32 %v399_v48, %v381_v56  ;;  %v280_v2 = vmul.f32 %v228_v63, %v228_v63 }
 0x112   :  { %v362_v4 = vmin.f32 %v361_v50, %v339_v59  ;;  %v363_v5 = vmax.f32 %v361_v50, %v339_v59  ;;  %v316_v6 = vmin.f32 %v315_v52, %v294_v61  ;;  %v317_v7 = vmax.f32 %v315_v52, %v294_v61 }
 0x113   :  { %v1806_v8 = vmin.f32 %v416_v55, %v400_v0  ;;  %v418_v9 = vmax.f32 %v416_v55, %v400_v0  ;;  %v295_v10 = vadd.f32 %v280_v2, %v265_v62  ;;  %v232_v11 = vpop.f32.mrb[22].mxu0 }
 0x114   :  { %v383_v12 = vmin.f32 %v382_v57, %v362_v4  ;;  %v384_v13 = vmax.f32 %v382_v57, %v362_v4  ;;  %v341_v14 = vmin.f32 %v340_v60, %v316_v6  ;;  %v342_v15 = vmax.f32 %v340_v60, %v316_v6  ;;  %v234_v16 = vpop.f32.mrb[23].mxu0 }
 0x115   :  { %v432_v17 = vmin.f32 %v1804_v54, %v1806_v8  ;;  %v1812_v18 = vmax.f32 %v1804_v54, %v1806_v8  ;;  %v318_v19 = vmin.f32 %v317_v7, %v295_v10  ;;  %v319_v20 = vmax.f32 %v317_v7, %v295_v10 }
 0x116   :  { %v402_v21 = vmin.f32 %v401_v1, %v383_v12  ;;  %v403_v22 = vmax.f32 %v401_v1, %v383_v12  ;;  %v364_v23 = vmin.f32 %v363_v5, %v341_v14  ;;  %v365_v24 = vmax.f32 %v363_v5, %v341_v14 }
 0x117   :  { %v343_v25 = vmin.f32 %v342_v15, %v318_v19  ;;  %v344_v26 = vmax.f32 %v342_v15, %v318_v19  ;;  %v266_v27 = vmul.f32 %v232_v11, %v232_v11  ;;  %v281_v28 = vmul.f32 %v234_v16, %v234_v16  ;;  %v238_v29 = vpop.f32.mrb[24].mxu0 }
 0x118   :  { %v419_v30 = vmin.f32 %v418_v9, %v402_v21  ;;  %v420_v31 = vmax.f32 %v418_v9, %v402_v21  ;;  %v385_v32 = vmin.f32 %v384_v13, %v364_v23  ;;  %v386_v33 = vmax.f32 %v384_v13, %v364_v23  ;;  %v240_v34 = vpop.f32.mrb[25].mxu0 }
 0x119   :  { %v366_v35 = vmin.f32 %v365_v24, %v343_v25  ;;  %v367_v36 = vmax.f32 %v365_v24, %v343_v25  ;;  %v296_v37 = vadd.f32 %v281_v28, %v266_v27  ;;  %v267_v38 = vmul.f32 %v238_v29, %v238_v29 }
 0x11a   :  { %v434_v39 = vmin.f32 %v1812_v18, %v419_v30  ;;  %v435_v40 = vmax.f32 %v1812_v18, %v419_v30  ;;  %v404_v41 = vmin.f32 %v403_v22, %v385_v32  ;;  %v405_v42 = vmax.f32 %v403_v22, %v385_v32 }
 0x11b   :  { %v387_v44 = vmin.f32 %v386_v33, %v366_v35  ;;  %v388_v45 = vmax.f32 %v386_v33, %v366_v35  ;;  %v320_v46 = vmin.f32 %v319_v20, %v296_v37  ;;  %v321_v47 = vmax.f32 %v319_v20, %v296_v37  ;;  %v244_v48 = vpop.f32.mrb[26].mxu0 }
 0x11c   :  { %v421_v49 = vmin.f32 %v420_v31, %v404_v41  ;;  %v422_v50 = vmax.f32 %v420_v31, %v404_v41  ;;  %v282_v51 = vmul.f32 %v240_v34, %v240_v34  ;;  %v268_v52 = vmul.f32 %v244_v48, %v244_v48  ;;  %v246_v53 = vpop.f32.mrb[27].mxu0 }
 0x11d   :  { %v406_v55 = vmin.f32 %v405_v42, %v387_v44  ;;  %v407_v56 = vmax.f32 %v405_v42, %v387_v44  ;;  %v345_v57 = vmin.f32 %v344_v26, %v320_v46  ;;  %v346_v58 = vmax.f32 %v344_v26, %v320_v46 }
 0x11e   :  { %v297_v59 = vadd.f32 %v282_v51, %v267_v38  ;;  %v283_v60 = vmul.f32 %v246_v53, %v246_v53  ;;  %v436_v61 = vmin.f32 %v435_v40, %v421_v49  ;;  %v437_v62 = vmax.f32 %v435_v40, %v421_v49 }
 0x11f   :  { %v423_v63 = vmin.f32 %v422_v50, %v406_v55  ;;  %v424_v0 = vmax.f32 %v422_v50, %v406_v55  ;;  %v368_v1 = vmin.f32 %v367_v36, %v345_v57  ;;  %v369_v2 = vmax.f32 %v367_v36, %v345_v57  ;;  %v250_v4 = vpop.f32.mrb[28].mxu0 }
 0x120   :  { %v322_v5 = vmin.f32 %v321_v47, %v297_v59  ;;  %v323_v6 = vmax.f32 %v321_v47, %v297_v59  ;;  %v298_v7 = vadd.f32 %v283_v60, %v268_v52  ;;  %v269_v9 = vmul.f32 %v250_v4, %v250_v4  ;;  %v252_v10 = vpop.f32.mrb[29].mxu0  ;;  %v544_v60 = vld [vmem:[%s2316_s3 + $0x80] sm:$0xff]  ;;  %v547_v4 = vld [vmem:[%s2316_s3 + $0x98] sm:$0xff] }
 0x121   :  { %v389_v11 = vmin.f32 %v388_v45, %v368_v1  ;;  %v390_v12 = vmax.f32 %v388_v45, %v368_v1  ;;  %v284_v13 = vmul.f32 %v252_v10, %v252_v10  ;;  %v438_v14 = vmin.f32 %v437_v62, %v423_v63  ;;  %v550_v10 = vld [vmem:[%s2316_s3 + $0xb0] sm:$0xff] }
 0x122   :  { %v347_v15 = vmin.f32 %v346_v58, %v322_v5  ;;  %v348_v16 = vmax.f32 %v346_v58, %v322_v5  ;;  %v324_v18 = vmin.f32 %v323_v6, %v298_v7  ;;  %v325_v19 = vmax.f32 %v323_v6, %v298_v7  ;;  %v548_v6 = vld [vmem:[%s2316_s3 + $0xa0] sm:$0xff]  ;;  %v549_v7 = vld [vmem:[%s2316_s3 + $0xa8] sm:$0xff] }
 0x123   :  { %v408_v20 = vmin.f32 %v407_v56, %v389_v11  ;;  %v409_v21 = vmax.f32 %v407_v56, %v389_v11  ;;  %v299_v22 = vadd.f32 %v284_v13, %v269_v9  ;;  %v439_v23 = vmax.f32 %v437_v62, %v423_v63  ;;  %v553_v13 = vld [vmem:[%s2316_s3 + $0xc8] sm:$0xff] }
 0x124   :  { %v370_v24 = vmin.f32 %v369_v2, %v347_v15  ;;  %v371_v25 = vmax.f32 %v369_v2, %v347_v15  ;;  %v349_v26 = vmin.f32 %v348_v16, %v324_v18  ;;  %v350_v27 = vmax.f32 %v348_v16, %v324_v18  ;;  %v546_v2 = vld [vmem:[%s2316_s3 + $0x90] sm:$0xff]  ;;  %v685_v15 = vld [vmem:[%s2317_s4 + $0x1a8] sm:$0xff]  ;;  %v687_v16 = vld [vmem:[%s2317_s4 + $0x1b8] sm:$0xff] }
 0x125   :  { %v326_v28 = vmin.f32 %v325_v19, %v299_v22  ;;  %v425_v29 = vmin.f32 %v424_v0, %v408_v20  ;;  %v426_v30 = vmax.f32 %v424_v0, %v408_v20  ;;  %v447_v31 = vmax.f32 %v432_v17, %v434_v39  ;;  %v684_v18 = vld [vmem:[%s2317_s4 + $0x1a0] sm:$0xff]  ;;  %v686_v20 = vld [vmem:[%s2317_s4 + $0x1b0] sm:$0xff]  ;;  %v555_v22 = vld [vmem:[%s2316_s3 + $0xd8] sm:$0xff] }
 0x126   :  { %v391_v32 = vmin.f32 %v390_v12, %v370_v24  ;;  %v392_v33 = vmax.f32 %v390_v12, %v370_v24  ;;  %v372_v34 = vmin.f32 %v371_v25, %v349_v26  ;;  %v373_v35 = vmax.f32 %v371_v25, %v349_v26  ;;  %v552_v12 = vld [vmem:[%s2316_s3 + $0xc0] sm:$0xff]  ;;  %v689_v25 = vld [vmem:[%s2317_s4 + $0x1c8] sm:$0xff]  ;;  %v691_v26 = vld [vmem:[%s2317_s4 + $0x1d8] sm:$0xff] }
 0x127   :  { %v351_v36 = vmin.f32 %v350_v27, %v326_v28  ;;  %v440_v37 = vmin.f32 %v439_v23, %v425_v29  ;;  %v441_v38 = vmax.f32 %v439_v23, %v425_v29  ;;  %v448_v40 = vmax.f32 %v447_v31, %v436_v61  ;;  %v545_v61 = vld [vmem:[%s2316_s3 + $0x88] sm:$0xff]  ;;  %v688_v27 = vld [vmem:[%s2317_s4 + $0x1c0] sm:$0xff]  ;;  %v690_v29 = vld [vmem:[%s2317_s4 + $0x1d0] sm:$0xff] }
 0x128   :  { %v410_v41 = vmin.f32 %v409_v21, %v391_v32  ;;  %v411_v42 = vmax.f32 %v409_v21, %v391_v32  ;;  %v393_v44 = vmin.f32 %v392_v33, %v372_v34  ;;  %v394_v45 = vmax.f32 %v392_v33, %v372_v34  ;;  %v554_v21 = vld [vmem:[%s2316_s3 + $0xd0] sm:$0xff]  ;;  %v557_v31 = vld [vmem:[%s2316_s3 + $0xe8] sm:$0xff] }
 0x129   :  { %v374_v46 = vmin.f32 %v373_v35, %v351_v36  ;;  %v449_v47 = vmax.f32 %v448_v40, %v438_v14  ;;  %v1208_v0 = vpack.c.bf16 %v545_v61, %v544_v60  ;;  %v1211_v5 = vpack.c.bf16 %v547_v4, %v546_v2  ;;  %v693_v34 = vld [vmem:[%s2317_s4 + $0x1e8] sm:$0xff]  ;;  %v695_v35 = vld [vmem:[%s2317_s4 + $0x1f8] sm:$0xff]  ;;  %v692_v36 = vld [vmem:[%s2317_s4 + $0x1e0] sm:$0xff] }
 0x12a   :  { %v412_v48 = vmin.f32 %v411_v42, %v393_v44  ;;  %v413_v49 = vmax.f32 %v411_v42, %v393_v44  ;;  %v427_v50 = vmin.f32 %v426_v30, %v410_v41  ;;  %v428_v51 = vmax.f32 %v426_v30, %v410_v41  ;;  %v556_v30 = vld [vmem:[%s2316_s3 + $0xe0] sm:$0xff]  ;;  %v558_v40 = vld [vmem:[%s2316_s3 + $0xf0] sm:$0xff]  ;;  %v559_v41 = vld [vmem:[%s2316_s3 + $0xf8] sm:$0xff] }
 0x12b   :  { %v395_v54 = vmin.f32 %v394_v45, %v374_v46  ;;  %v450_v8 = vmax.f32 %v449_v47, %v440_v37  ;;  %v1214_v9 = vpack.c.bf16 %v549_v7, %v548_v6  ;;  %v1220_v14 = vpack.c.bf16 %v553_v13, %v552_v12  ;;  %v631_v42 = vld [vmem:[%s2318_s1 + $0x8] sm:$0xff]  ;;  %v630_v46 = vld [vmem:[%s2318_s1] sm:$0xff]  ;;  %v787_v61 = vld [vmem:[%s2319_s5 + $0x90] sm:$0xff] }
 0x12c   :  { %v429_v17 = vmin.f32 %v428_v51, %v412_v48  ;;  %v430_v39 = vmax.f32 %v428_v51, %v412_v48  ;;  %v442_v52 = vmin.f32 %v441_v38, %v427_v50  ;;  %v443_v53 = vmax.f32 %v441_v38, %v427_v50  ;;  %v694_v38 = vld [vmem:[%s2317_s4 + $0x1f0] sm:$0xff]  ;;  %760 = vmatprep.mubr.f32.mxu0 %v631_v42  ;;  %v770_v47 = vld [vmem:[%s2319_s5 + $0x8] sm:$0xff]  ;;  %v804_v7 = vld [vmem:[%s2319_s5 + $0x118] sm:$0xff] }
 0x12d   :  { %v414_v55 = vmin.f32 %v413_v49, %v395_v54  ;;  %v1283_v19 = vpack.c.bf16 %v687_v16, %v685_v15  ;;  %v1285_v23 = vpack.c.bf16 %v686_v20, %v684_v18  ;;  %v1223_v24 = vpack.c.bf16 %v555_v22, %v554_v21  ;;  %v774_v48 = vld [vmem:[%s2319_s5 + $0x28] sm:$0xff]  ;;  %v772_v49 = vld [vmem:[%s2319_s5 + $0x18] sm:$0xff]  ;;  %v771_v54 = vld [vmem:[%s2319_s5 + $0x10] sm:$0xff] }
 0x12e   :  { %v444_v56 = vmin.f32 %v443_v53, %v429_v17  ;;  %v445_v57 = vmax.f32 %v443_v53, %v429_v17  ;;  %v451_v58 = vmax.f32 %v450_v8, %v442_v52  ;;  %v1287_v28 = vpack.c.bf16 %v691_v26, %v689_v25  ;;  %v775_v8 = vld [vmem:[%s2319_s5 + $0x30] sm:$0xff]  ;;  %v784_v52 = vld [vmem:[%s2319_s5 + $0x78] sm:$0xff] }
 0x12f   :  { %v431_v59 = vmin.f32 %v430_v39, %v414_v55  ;;  %1284 = vmatprep.subr.bf16.mxu0 %v1283_v19  ;;  %v1289_v32 = vpack.c.bf16 %v690_v29, %v688_v27  ;;  %v1226_v33 = vpack.c.bf16 %v557_v31, %v556_v30  ;;  %v1291_v37 = vpack.c.bf16 %v695_v35, %v693_v34  ;;  %v780_v39 = vld [vmem:[%s2319_s5 + $0x58] sm:$0xff]  ;;  %v779_v55 = vld [vmem:[%s2319_s5 + $0x50] sm:$0xff] }
 0x130   :  { %v452_v62 = vmax.f32 %v451_v58, %v444_v56  ;;  %1286 = vmatpush1.bf16.msra.mxu0 %v1285_v23  ;;  %v1293_v44 = vpack.c.bf16 %v694_v38, %v692_v36  ;;  %v1229_v45 = vpack.c.bf16 %v559_v41, %v558_v40  ;;  %v1295_v50 = vpack.c.bf16 %v774_v48, %v770_v47  ;;  %v783_v56 = vld [vmem:[%s2319_s5 + $0x70] sm:$0xff]  ;;  %v788_v58 = vld [vmem:[%s2319_s5 + $0x98] sm:$0xff] }
 0x131   :  { %v446_v63 = vmin.f32 %v445_v57, %v431_v59  ;;  %1288 = vmatprep.subr.bf16.mxu0 %v1287_v28  ;;  %v1361_v17 = vpack.c.bf16 %v775_v8, %v771_v54  ;;  %v1363_v53 = vpack.c.bf16 %v784_v52, %v780_v39  ;;  %v1365_v57 = vpack.c.bf16 %v783_v56, %v779_v55  ;;  %v792_v59 = vld [vmem:[%s2319_s5 + $0xb8] sm:$0xff]  ;;  %v795_v4 = vld [vmem:[%s2319_s5 + $0xd0] sm:$0xff] }
 0x132   :  { %v1367_v60 = vpack.c.bf16 %v792_v59, %v788_v58  ;;  %v812_v13 = vld [vmem:[%s2319_s5 + $0x158] sm:$0xff]  ;;  %v811_v16 = vld [vmem:[%s2319_s5 + $0x150] sm:$0xff] }
 0x133   :  { %v453_v1 = vmax.f32 %v452_v62, %v446_v63  ;;  %v791_v62 = vld [vmem:[%s2319_s5 + $0xb0] sm:$0xff]  ;;  %v820_v20 = vld [vmem:[%s2319_s5 + $0x198] sm:$0xff] }
 0x134   :  { %1290 = vmatpush1.bf16.msra.mxu0 %v1289_v32  ;;  %v1369_v63 = vpack.c.bf16 %v791_v62, %v787_v61  ;;  %v815_v18 = vld [vmem:[%s2319_s5 + $0x170] sm:$0xff]  ;;  %v824_v21 = vld [vmem:[%s2319_s5 + $0x1b8] sm:$0xff] }
 0x135   :  { %1130 = vmatmul.mubr.f32.vlgmr.msra.gmra.mrb[0].mxu1 %v453_v1  ;;  %1292 = vmatprep.subr.bf16.mxu0 %v1291_v37  ;;  %v800_v1 = vld [vmem:[%s2319_s5 + $0xf8] sm:$0xff]  ;;  %v1381_v19 = vpack.c.bf16 %v815_v18, %v811_v16  ;;  %v1383_v22 = vpack.c.bf16 %v824_v21, %v820_v20  ;;  %v819_v23 = vld [vmem:[%s2319_s5 + $0x190] sm:$0xff]  ;;  %v781_v20 = vld [vmem:[%s2319_s5 + $0x60] sm:$0xff] }
 0x136   :  { %1209 = vmatpush3.bf16.msra.mxu1 %v1208_v0  ;;  %1164 = vmatprep.mubr.msk.f32.mxu1 %vm1430_vm1, %v1428_v3  ;;  %v551_v3 = vld [vmem:[%s2316_s3 + $0xb8] sm:$0xff]  ;;  %v827_v29 = vld [vmem:[%s2319_s5 + $0x1d0] sm:$0xff] }
 0x137   :  { %1210 = vmatprep.subr.bf16.mxu1 %v1429_v43  ;;  %v1217_v11 = vpack.c.bf16 %v551_v3, %v550_v10  ;;  %v796_v0 = vld [vmem:[%s2319_s5 + $0xd8] sm:$0xff]  ;;  %v803_v3 = vld [vmem:[%s2319_s5 + $0x110] sm:$0xff] }
 0x138   :  { %1294 = vmatpush1.bf16.msra.mxu0 %v1293_v44  ;;  %v1371_v2 = vpack.c.bf16 %v800_v1, %v796_v0  ;;  %v828_v26 = vld [vmem:[%s2319_s5 + $0x1d8] sm:$0xff]  ;;  %v831_v30 = vld [vmem:[%s2319_s5 + $0x1f0] sm:$0xff] }
 0x139   :  { %v832_v27 = vld [vmem:[%s2319_s5 + $0x1f8] sm:$0xff]  ;;  %v1389_v31 = vpack.c.bf16 %v831_v30, %v827_v29  ;;  %v835_v35 = vld [vmem:[%s2319_s5 + $0x210] sm:$0xff]  ;;  %v798_v29 = vld [vmem:[%s2319_s5 + $0xe8] sm:$0xff] }
 0x13a   :  { %1212 = vmatpush3.bf16.msra.mxu1 %v1211_v5  ;;  %v799_v5 = vld [vmem:[%s2319_s5 + $0xf0] sm:$0xff]  ;;  %v1387_v28 = vpack.c.bf16 %v832_v27, %v828_v26  ;;  %v836_v32 = vld [vmem:[%s2319_s5 + $0x218] sm:$0xff]  ;;  %v785_v26 = vld [vmem:[%s2319_s5 + $0x80] sm:$0xff] }
 0x13b   :  { %1213 = vmatprep.subr.bf16.mxu1 %v1429_v43  ;;  %761 = vmatmul.mubr.f32.vlgmr.msra.gmra.mrb[30].mxu0 %v630_v46  ;;  %v1373_v6 = vpack.c.bf16 %v799_v5, %v795_v4  ;;  %v839_v36 = vld [vmem:[%s2319_s5 + $0x230] sm:$0xff]  ;;  %v844_v38 = vld [vmem:[%s2319_s5 + $0x258] sm:$0xff]  ;;  %v789_v27 = vld [vmem:[%s2319_s5 + $0xa0] sm:$0xff] }
 0x13c   :  { %v1393_v37 = vpack.c.bf16 %v839_v36, %v835_v35  ;;  %v848_v40 = vld [vmem:[%s2319_s5 + $0x278] sm:$0xff]  ;;  %v843_v42 = vld [vmem:[%s2319_s5 + $0x250] sm:$0xff]  ;;  %v1305_v30 = vpack.c.bf16 %v789_v27, %v785_v26  ;;  %v806_v35 = vld [vmem:[%s2319_s5 + $0x128] sm:$0xff] }
 0x13d   :  { %v1395_v41 = vpack.c.bf16 %v848_v40, %v844_v38  ;;  %v847_v44 = vld [vmem:[%s2319_s5 + $0x270] sm:$0xff]  ;;  %v852_v46 = vld [vmem:[%s2319_s5 + $0x298] sm:$0xff]  ;;  %v801_v38 = vld [vmem:[%s2319_s5 + $0x100] sm:$0xff] }
 0x13e   :  { %1215 = vmatpush3.bf16.msra.mxu1 %v1214_v9  ;;  %v808_v9 = vld [vmem:[%s2319_s5 + $0x138] sm:$0xff]  ;;  %v863_v39 = vld [vmem:[%s2319_s5 + $0x2f0] sm:$0xff]  ;;  %v805_v40 = vld [vmem:[%s2319_s5 + $0x120] sm:$0xff] }
 0x13f   :  { %1216 = vmatprep.subr.bf16.mxu1 %v1429_v43  ;;  %v1375_v10 = vpack.c.bf16 %v808_v9, %v804_v7  ;;  %v856_v47 = vld [vmem:[%s2319_s5 + $0x2b8] sm:$0xff]  ;;  %v871_v58 = vld [vmem:[%s2319_s5 + $0x330] sm:$0xff] }
 0x140   :  { %v1399_v48 = vpack.c.bf16 %v856_v47, %v852_v46  ;;  %v864_v54 = vld [vmem:[%s2319_s5 + $0x2f8] sm:$0xff]  ;;  %v879_v0 = vld [vmem:[%s2319_s5 + $0x370] sm:$0xff]  ;;  %v809_v46 = vld [vmem:[%s2319_s5 + $0x140] sm:$0xff] }
 0x141   :  { %v872_v55 = vld [vmem:[%s2319_s5 + $0x338] sm:$0xff]  ;;  %v887_v7 = vld [vmem:[%s2319_s5 + $0x3b0] sm:$0xff]  ;;  %v813_v47 = vld [vmem:[%s2319_s5 + $0x160] sm:$0xff] }
 0x142   :  { %1218 = vmatpush3.bf16.msra.mxu1 %v1217_v11  ;;  %v807_v11 = vld [vmem:[%s2319_s5 + $0x130] sm:$0xff]  ;;  %v880_v61 = vld [vmem:[%s2319_s5 + $0x378] sm:$0xff] }
 0x143   :  { %1219 = vmatprep.subr.bf16.mxu1 %v1429_v43  ;;  %v1377_v12 = vpack.c.bf16 %v807_v11, %v803_v3  ;;  %v888_v4 = vld [vmem:[%s2319_s5 + $0x3b8] sm:$0xff] }
 0x146   :  { %1221 = vmatpush3.bf16.msra.mxu1 %v1220_v14  ;;  %v816_v14 = vld [vmem:[%s2319_s5 + $0x178] sm:$0xff] }
 0x147   :  { %1222 = vmatprep.subr.bf16.mxu1 %v1429_v43  ;;  %v1379_v15 = vpack.c.bf16 %v816_v14, %v812_v13  ;;  %v773_v13 = vld [vmem:[%s2319_s5 + $0x20] sm:$0xff]  ;;  %v778_v14 = vld [vmem:[%s2319_s5 + $0x48] sm:$0xff] }
 0x14a   :  { %1224 = vmatpush3.bf16.msra.mxu1 %v1223_v24  ;;  %v823_v24 = vld [vmem:[%s2319_s5 + $0x1b0] sm:$0xff] }
 0x14b   :  { %1225 = vmatprep.subr.bf16.mxu1 %v1429_v43  ;;  %v1385_v25 = vpack.c.bf16 %v823_v24, %v819_v23  ;;  %v790_v23 = vld [vmem:[%s2319_s5 + $0xa8] sm:$0xff] }
 0x14e   :  { %1227 = vmatpush3.bf16.msra.mxu1 %v1226_v33  ;;  %v840_v33 = vld [vmem:[%s2319_s5 + $0x238] sm:$0xff] }
 0x14f   :  { %1228 = vmatprep.subr.bf16.mxu1 %v1429_v43  ;;  %v776_v43 = vld [vmem:[%s2319_s5 + $0x38] sm:$0xff]  ;;  %v1391_v34 = vpack.c.bf16 %v840_v33, %v836_v32  ;;  %v793_v32 = vld [vmem:[%s2319_s5 + $0xc0] sm:$0xff] }
 0x150   :  { %v1359_v51 = vpack.c.bf16 %v776_v43, %v772_v49  ;;  %v851_v49 = vld [vmem:[%s2319_s5 + $0x290] sm:$0xff]  ;;  %v797_v33 = vld [vmem:[%s2319_s5 + $0xe0] sm:$0xff] }
 0x151   :  { %v1309_v36 = vpack.c.bf16 %v797_v33, %v793_v32 }
 0x152   :  { %1230 = vmatpush3.bf16.msra.mxu1 %v1229_v45  ;;  %1360 = vmatprep.subr.bf16.mxu0 %v1359_v51  ;;  %v1397_v45 = vpack.c.bf16 %v847_v44, %v843_v42  ;;  %v860_v51 = vld [vmem:[%s2319_s5 + $0x2d8] sm:$0xff]  ;;  %v814_v42 = vld [vmem:[%s2319_s5 + $0x168] sm:$0xff]  ;;  %v1313_v44 = vpack.c.bf16 %v805_v40, %v801_v38 }
 0x153   :  { %1296 = vmatprep.subr.bf16.mxu1 %v1295_v50  ;;  %1362 = vmatpush1.bf16.msra.mxu0 %v1361_v17  ;;  %v855_v50 = vld [vmem:[%s2319_s5 + $0x2b0] sm:$0xff]  ;;  %v1403_v8 = vpack.c.bf16 %v864_v54, %v860_v51  ;;  %v817_v51 = vld [vmem:[%s2319_s5 + $0x180] sm:$0xff]  ;;  %v894_v38 = vld [vmem:[%s2319_s5 + $0x3e8] sm:$0xff] }
 0x154   :  { %1364 = vmatprep.subr.bf16.mxu0 %v1363_v53  ;;  %v1401_v43 = vpack.c.bf16 %v855_v50, %v851_v49  ;;  %v859_v17 = vld [vmem:[%s2319_s5 + $0x2d0] sm:$0xff]  ;;  %v868_v53 = vld [vmem:[%s2319_s5 + $0x318] sm:$0xff]  ;;  %v822_v49 = vld [vmem:[%s2319_s5 + $0x1a8] sm:$0xff]  ;;  %v1317_v50 = vpack.c.bf16 %v813_v47, %v809_v46 }
 0x155   :  { %v1405_v52 = vpack.c.bf16 %v863_v39, %v859_v17  ;;  %v1407_v56 = vpack.c.bf16 %v872_v55, %v868_v53  ;;  %v821_v54 = vld [vmem:[%s2319_s5 + $0x1a0] sm:$0xff]  ;;  %v830_v17 = vld [vmem:[%s2319_s5 + $0x1e8] sm:$0xff]  ;;  %v892_v40 = vld [vmem:[%s2319_s5 + $0x3d8] sm:$0xff] }
 0x156   :  { %v1321_v39 = vpack.c.bf16 %v821_v54, %v817_v51  ;;  %v825_v53 = vld [vmem:[%s2319_s5 + $0x1c0] sm:$0xff] }
 0x157   :  { %1366 = vmatpush1.bf16.msra.mxu0 %v1365_v57  ;;  %v867_v57 = vld [vmem:[%s2319_s5 + $0x310] sm:$0xff]  ;;  %v829_v55 = vld [vmem:[%s2319_s5 + $0x1e0] sm:$0xff] }
 0x158   :  { %1368 = vmatprep.subr.bf16.mxu0 %v1367_v60  ;;  %v1409_v59 = vpack.c.bf16 %v871_v58, %v867_v57  ;;  %v876_v60 = vld [vmem:[%s2319_s5 + $0x358] sm:$0xff]  ;;  %v838_v57 = vld [vmem:[%s2319_s5 + $0x228] sm:$0xff]  ;;  %v1325_v58 = vpack.c.bf16 %v829_v55, %v825_v53 }
 0x159   :  { %v1411_v62 = vpack.c.bf16 %v880_v61, %v876_v60  ;;  %v833_v60 = vld [vmem:[%s2319_s5 + $0x200] sm:$0xff] }
 0x15a   :  { %v837_v61 = vld [vmem:[%s2319_s5 + $0x220] sm:$0xff] }
 0x15b   :  { %1370 = vmatpush1.bf16.msra.mxu0 %v1369_v63  ;;  %v875_v63 = vld [vmem:[%s2319_s5 + $0x350] sm:$0xff] }
 0x15c   :  { %1372 = vmatprep.subr.bf16.mxu0 %v1371_v2  ;;  %v1413_v1 = vpack.c.bf16 %v879_v0, %v875_v63  ;;  %v884_v2 = vld [vmem:[%s2319_s5 + $0x398] sm:$0xff]  ;;  %v846_v63 = vld [vmem:[%s2319_s5 + $0x268] sm:$0xff]  ;;  %v1329_v0 = vpack.c.bf16 %v837_v61, %v833_v60 }
 0x15d   :  { %v1415_v5 = vpack.c.bf16 %v888_v4, %v884_v2  ;;  %v841_v2 = vld [vmem:[%s2319_s5 + $0x240] sm:$0xff] }
 0x15e   :  { %v845_v4 = vld [vmem:[%s2319_s5 + $0x260] sm:$0xff] }
 0x15f   :  { %1374 = vmatpush1.bf16.msra.mxu0 %v1373_v6  ;;  %v883_v6 = vld [vmem:[%s2319_s5 + $0x390] sm:$0xff] }
 0x160   :  { %1376 = vmatprep.subr.bf16.mxu0 %v1375_v10  ;;  %v1417_v9 = vpack.c.bf16 %v887_v7, %v883_v6  ;;  %v854_v6 = vld [vmem:[%s2319_s5 + $0x2a8] sm:$0xff]  ;;  %v1333_v7 = vpack.c.bf16 %v845_v4, %v841_v2 }
 0x163   :  { %1378 = vmatpush1.bf16.msra.mxu0 %v1377_v12  ;;  %v769_v12 = vld [vmem:[%s2319_s5] sm:$0xff] }
 0x164   :  { %1380 = vmatprep.subr.bf16.mxu0 %v1379_v15  ;;  %v782_v15 = vld [vmem:[%s2319_s5 + $0x68] sm:$0xff]  ;;  %v1297_v16 = vpack.c.bf16 %v773_v13, %v769_v12 }
 0x165   :  { %v1299_v18 = vpack.c.bf16 %v782_v15, %v778_v14  ;;  %v862_v12 = vld [vmem:[%s2319_s5 + $0x2e8] sm:$0xff]  ;;  %v857_v15 = vld [vmem:[%s2319_s5 + $0x2c0] sm:$0xff] }
 0x167   :  { %1382 = vmatpush1.bf16.msra.mxu0 %v1381_v19  ;;  %v777_v19 = vld [vmem:[%s2319_s5 + $0x40] sm:$0xff] }
 0x168   :  { %1384 = vmatprep.subr.bf16.mxu0 %v1383_v22  ;;  %v786_v22 = vld [vmem:[%s2319_s5 + $0x88] sm:$0xff]  ;;  %v1301_v24 = vpack.c.bf16 %v781_v20, %v777_v19 }
 0x169   :  { %v870_v19 = vld [vmem:[%s2319_s5 + $0x328] sm:$0xff] }
 0x16b   :  { %1386 = vmatpush1.bf16.msra.mxu0 %v1385_v25  ;;  %v1303_v25 = vpack.c.bf16 %v790_v23, %v786_v22  ;;  %v865_v22 = vld [vmem:[%s2319_s5 + $0x300] sm:$0xff] }
 0x16c   :  { %1388 = vmatprep.subr.bf16.mxu0 %v1387_v28  ;;  %v794_v28 = vld [vmem:[%s2319_s5 + $0xc8] sm:$0xff]  ;;  %v869_v23 = vld [vmem:[%s2319_s5 + $0x320] sm:$0xff] }
 0x16d   :  { %v1345_v26 = vpack.c.bf16 %v869_v23, %v865_v22 }
 0x16f   :  { %1390 = vmatpush1.bf16.msra.mxu0 %v1389_v31  ;;  %v1307_v31 = vpack.c.bf16 %v798_v29, %v794_v28  ;;  %v873_v28 = vld [vmem:[%s2319_s5 + $0x340] sm:$0xff] }
 0x170   :  { %1392 = vmatprep.subr.bf16.mxu0 %v1391_v34  ;;  %v802_v34 = vld [vmem:[%s2319_s5 + $0x108] sm:$0xff]  ;;  %v877_v29 = vld [vmem:[%s2319_s5 + $0x360] sm:$0xff] }
 0x171   :  { %v1349_v32 = vpack.c.bf16 %v877_v29, %v873_v28 }
 0x173   :  { %1394 = vmatpush1.bf16.msra.mxu0 %v1393_v37  ;;  %v1311_v37 = vpack.c.bf16 %v806_v35, %v802_v34  ;;  %v881_v34 = vld [vmem:[%s2319_s5 + $0x380] sm:$0xff] }
 0x174   :  { %1396 = vmatprep.subr.bf16.mxu0 %v1395_v41  ;;  %v810_v41 = vld [vmem:[%s2319_s5 + $0x148] sm:$0xff]  ;;  %v885_v35 = vld [vmem:[%s2319_s5 + $0x3a0] sm:$0xff] }
 0x177   :  { %1398 = vmatpush1.bf16.msra.mxu0 %v1397_v45  ;;  %v1315_v45 = vpack.c.bf16 %v814_v42, %v810_v41  ;;  %v896_v42 = vld [vmem:[%s2319_s5 + $0x3f8] sm:$0xff] }
 0x178   :  { %1400 = vmatprep.subr.bf16.mxu0 %v1399_v48  ;;  %v818_v48 = vld [vmem:[%s2319_s5 + $0x188] sm:$0xff]  ;;  %v1419_v46 = vpack.c.bf16 %v896_v42, %v892_v40 }
 0x17b   :  { %1402 = vmatpush1.bf16.msra.mxu0 %v1401_v43  ;;  %v1319_v43 = vpack.c.bf16 %v822_v49, %v818_v48  ;;  %v891_v48 = vld [vmem:[%s2319_s5 + $0x3d0] sm:$0xff] }
 0x17c   :  { %1404 = vmatprep.subr.bf16.mxu0 %v1403_v8  ;;  %v826_v8 = vld [vmem:[%s2319_s5 + $0x1c8] sm:$0xff]  ;;  %v895_v49 = vld [vmem:[%s2319_s5 + $0x3f0] sm:$0xff] }
 0x17f   :  { %1406 = vmatpush1.bf16.msra.mxu0 %v1405_v52  ;;  %v1323_v52 = vpack.c.bf16 %v830_v17, %v826_v8 }
 0x180   :  { %1408 = vmatprep.subr.bf16.mxu0 %v1407_v56  ;;  %v834_v56 = vld [vmem:[%s2319_s5 + $0x208] sm:$0xff] }
 0x183   :  { %1410 = vmatpush1.bf16.msra.mxu0 %v1409_v59  ;;  %v1327_v59 = vpack.c.bf16 %v838_v57, %v834_v56 }
 0x184   :  { %1412 = vmatprep.subr.bf16.mxu0 %v1411_v62  ;;  %v842_v62 = vld [vmem:[%s2319_s5 + $0x248] sm:$0xff] }
 0x187   :  { %1414 = vmatpush1.bf16.msra.mxu0 %v1413_v1  ;;  %v1331_v1 = vpack.c.bf16 %v846_v63, %v842_v62 }
 0x188   :  { %1416 = vmatprep.subr.bf16.mxu0 %v1415_v5  ;;  %v850_v5 = vld [vmem:[%s2319_s5 + $0x288] sm:$0xff] }
 0x18b   :  { %1418 = vmatpush1.bf16.msra.mxu0 %v1417_v9  ;;  %v1335_v9 = vpack.c.bf16 %v854_v6, %v850_v5 }
 0x18c   :  { %1420 = vmatprep.subr.bf16.mxu0 %v1419_v46 }
 0x208   :  { %v536_v10 = vpop.f32.mrb[0].mxu1 }
 0x209   :  { %v541_v3 = vmax.f32 %v536_v10, 1e-38  ;;  %v1131_v11 = vpop.f32.mrb[1].mxu1  ;;  %vm540_vm2 = vcmp.gt.f32.partialorder %v536_v10, 0.0  ;;  %v849_v10 = vld [vmem:[%s2319_s5 + $0x280] sm:$0xff] }
 0x20a   :  { %v858_v11 = vld [vmem:[%s2319_s5 + $0x2c8] sm:$0xff] }
 0x20b   :  { %1426 = vrsqrt.f32 %v541_v3  ;;  %v853_v3 = vld [vmem:[%s2319_s5 + $0x2a0] sm:$0xff]  ;;  %v1339_v14 = vpack.c.bf16 %v862_v12, %v858_v11 }
 0x20c   :  { %v1337_v13 = vpack.c.bf16 %v853_v3, %v849_v10 }
 0x215   :  { %v1427_v21 = vpop.eup %1426 }
 0x216   :  { %1165 = vmatmul.mubr.msk.f32.vlgmr.msra.gmra.mrb[2].mxu1 %vm540_vm2, %v1427_v21 }
 0x217   :  { %1298 = vmatpush1.bf16.msra.mxu1 %v1297_v16  ;;  %v861_v16 = vld [vmem:[%s2319_s5 + $0x2e0] sm:$0xff] }
 0x218   :  { %1300 = vmatprep.subr.bf16.mxu1 %v1299_v18  ;;  %v866_v18 = vld [vmem:[%s2319_s5 + $0x308] sm:$0xff]  ;;  %v1341_v20 = vpack.c.bf16 %v861_v16, %v857_v15 }
 0x219   :  { %v1343_v21 = vpack.c.bf16 %v870_v19, %v866_v18 }
 0x21b   :  { %1302 = vmatpush1.bf16.msra.mxu1 %v1301_v24  ;;  %v874_v24 = vld [vmem:[%s2319_s5 + $0x348] sm:$0xff] }
 0x21c   :  { %1304 = vmatprep.subr.bf16.mxu1 %v1303_v25  ;;  %v878_v25 = vld [vmem:[%s2319_s5 + $0x368] sm:$0xff] }
 0x21d   :  { %v1347_v27 = vpack.c.bf16 %v878_v25, %v874_v24 }
 0x21f   :  { %1306 = vmatpush1.bf16.msra.mxu1 %v1305_v30  ;;  %v882_v30 = vld [vmem:[%s2319_s5 + $0x388] sm:$0xff] }
 0x220   :  { %1308 = vmatprep.subr.bf16.mxu1 %v1307_v31  ;;  %v886_v31 = vld [vmem:[%s2319_s5 + $0x3a8] sm:$0xff] }
 0x221   :  { %v1351_v33 = vpack.c.bf16 %v886_v31, %v882_v30 }
 0x223   :  { %1310 = vmatpush1.bf16.msra.mxu1 %v1309_v36  ;;  %v1353_v36 = vpack.c.bf16 %v885_v35, %v881_v34 }
 0x224   :  { %1312 = vmatprep.subr.bf16.mxu1 %v1311_v37  ;;  %v890_v37 = vld [vmem:[%s2319_s5 + $0x3c8] sm:$0xff] }
 0x225   :  { %v1355_v41 = vpack.c.bf16 %v894_v38, %v890_v37 }
 0x227   :  { %1314 = vmatpush1.bf16.msra.mxu1 %v1313_v44  ;;  %v889_v44 = vld [vmem:[%s2319_s5 + $0x3c0] sm:$0xff] }
 0x228   :  { %1316 = vmatprep.subr.bf16.mxu1 %v1315_v45  ;;  %v893_v45 = vld [vmem:[%s2319_s5 + $0x3e0] sm:$0xff] }
 0x229   :  { %v1357_v47 = vpack.c.bf16 %v893_v45, %v889_v44 }
 0x22b   :  { %1318 = vmatpush1.bf16.msra.mxu1 %v1317_v50  ;;  %v762_v50 = vpop.f32.mrb[30].mxu0 }
 0x22c   :  { %1320 = vmatprep.subr.bf16.mxu1 %v1319_v43  ;;  %v1421_v43 = vpack.c.bf16 %v895_v49, %v891_v48  ;;  %v764_v51 = vpop.f32.mrb[31].mxu0 }
 0x22e   :  { %1422 = vmatpush1.bf16.msra.mxu0 %v1421_v43 }
 0x22f   :  { %1322 = vmatpush1.bf16.msra.mxu1 %v1321_v39 }
 0x230   :  { %1324 = vmatprep.subr.bf16.mxu1 %v1323_v52 }
 0x233   :  { %1326 = vmatpush1.bf16.msra.mxu1 %v1325_v58 }
 0x234   :  { %1328 = vmatprep.subr.bf16.mxu1 %v1327_v59 }
 0x237   :  { %1330 = vmatpush1.bf16.msra.mxu1 %v1329_v0 }
 0x238   :  { %1332 = vmatprep.subr.bf16.mxu1 %v1331_v1 }
 0x23b   :  { %1334 = vmatpush1.bf16.msra.mxu1 %v1333_v7 }
 0x23c   :  { %1336 = vmatprep.subr.bf16.mxu1 %v1335_v9 }
 0x23f   :  { %1338 = vmatpush1.bf16.msra.mxu1 %v1337_v13 }
 0x240   :  { %1340 = vmatprep.subr.bf16.mxu1 %v1339_v14 }
 0x243   :  { %1342 = vmatpush1.bf16.msra.mxu1 %v1341_v20 }
 0x244   :  { %1344 = vmatprep.subr.bf16.mxu1 %v1343_v21 }
 0x247   :  { %1346 = vmatpush1.bf16.msra.mxu1 %v1345_v26 }
 0x248   :  { %1348 = vmatprep.subr.bf16.mxu1 %v1347_v27 }
 0x24b   :  { %1350 = vmatpush1.bf16.msra.mxu1 %v1349_v32 }
 0x24c   :  { %1352 = vmatprep.subr.bf16.mxu1 %v1351_v33 }
 0x24f   :  { %1354 = vmatpush1.bf16.msra.mxu1 %v1353_v36 }
 0x250   :  { %1356 = vmatprep.subr.bf16.mxu1 %v1355_v41 }
 0x253   :  { %1358 = vmatpush1.bf16.msra.mxu1 %v1357_v47 }
 0x2e9   :  { %v626_v54 = vpop.f32.mrb[2].mxu1 }
 0x2ea   :  { %v767_v8 = vmul.f32 %v762_v50, %v626_v54  ;;  %v768_v17 = vmul.f32 %v764_v51, %v626_v54  ;;  %v1166_v39 = vpop.f32.mrb[3].mxu1 }
 0x2ec   :  { %961 = vmatprep.mubr.f32.mxu1 %v768_v17  ;;  %1032 = vmatprep.mubr.f32.mxu0 %v768_v17 }
 0x2ed   :  { %962 = vmatmul.mubr.f32.vlgmr.msra.gmra.mrb[4].mxu1 %v767_v8  ;;  %1033 = vmatmul.mubr.f32.vlgmr.msra.gmra.mrb[32].mxu0 %v767_v8 }
 0x3c0   :  { %v963_v52 = vpop.f32.mrb[4].mxu1  ;;  %v1034_v53 = vpop.f32.mrb[32].mxu0 }
 0x3c1   :  { %1039 = vst [vmem:[%s2320_s6] sm:$0xff] %v963_v52  ;;  %1041 = vst [vmem:[%s2320_s6 + $0x10] sm:$0xff] %v1034_v53  ;;  %v965_v55 = vpop.f32.mrb[5].mxu1  ;;  %v1036_v56 = vpop.f32.mrb[33].mxu0 }
 0x3c2   :  { %1040 = vst [vmem:[%s2320_s6 + $0x8] sm:$0xff] %v965_v55  ;;  %1042 = vst [vmem:[%s2320_s6 + $0x18] sm:$0xff] %v1036_v56 }

</bundles_post_ra>
